<compile_context>
chip_gen: v5e
topology: v5e:2x2
jax: 0.10.0
libtpu: 0.0.40
codegen_flags: <defaults>
</compile_context>

<pallas_src>
import functools

import jax
import jax.numpy as jnp
from jax.experimental import pallas as pl
from jax.experimental.pallas import tpu as pltpu


# ----------------------------------------------------------------------------
# Fused kernel: LSTM recurrence + folded (purely linear) MQ-decoder.
# ----------------------------------------------------------------------------
def mqrnn_kernel(y_ref, x_ref, xf_ref, wih_y_ref, wih_x_ref, b_ref, whh_ref,
                 wh_ref, wx_ref, bout_ref, out_ref):
    # y_ref    : (S, Bb, input_size)   time-major data
    # x_ref    : (S, Bb, embed_size)   time-major encoder covariates
    # xf_ref   : (S, Bb, K*E)          time-major flattened future covariates
    # wih_y_ref: (input_size, 4H)      y-block of weight_ih.T
    # wih_x_ref: (embed_size, 4H)      x-block of weight_ih.T
    # b_ref    : (1, 4H)               bias_ih + bias_hh
    # whh_ref  : (H, 4H) packed (H%128==0) OR (4, H, H) per-gate (toy H)
    # wh_ref   : (H, KQp)              folded decoder weight (hidden part)
    # wx_ref   : (K*E, KQp)            folded decoder weight (covariate part)
    # bout_ref : (1, KQp)              folded decoder bias
    # out_ref  : (S, Bb, KQp)          lane-dense padded quantile output
    S, Bb = y_ref.shape[0], y_ref.shape[1]
    pack_gates = (len(whh_ref.shape) == 2)
    H = whh_ref.shape[0] if pack_gates else whh_ref.shape[1]

    # ---- Hoisted input projection (done once for all timesteps) ----
    # Tiny feature dims go to the VPU (rank-1 outer products); a real-sized
    # feature dim falls back to one big MXU matmul.
    def proj(feat_ref, w_ref):
        F = feat_ref.shape[-1]
        feat = feat_ref[...]                              # (S, Bb, F)
        w = w_ref[...]                                    # (F, 4H)
        if F <= 8:
            acc = feat[..., 0:1] * w[0:1, :]
            for e in range(1, F):
                acc = acc + feat[..., e:e + 1] * w[e:e + 1, :]
            return acc                                    # (S, Bb, 4H)
        flat = feat.reshape(S * Bb, F)
        g = jnp.dot(flat, w, preferred_element_type=jnp.float32)
        return g.reshape(S, Bb, w.shape[-1])

    gx = proj(y_ref, wih_y_ref) + proj(x_ref, wih_x_ref) + b_ref[...][None]

    if pack_gates:
        whh_p = whh_ref[...]                              # (H, 4H)
    else:
        # Per-gate recurrent weights and per-gate input projections, split
        # ONCE outside the serial loop (no 32-lane slicing per step).
        whh_i, whh_f, whh_g, whh_o = (whh_ref[0], whh_ref[1],
                                      whh_ref[2], whh_ref[3])
        gx_i = gx[..., 0 * H:1 * H]
        gx_f = gx[..., 1 * H:2 * H]
        gx_g = gx[..., 2 * H:3 * H]
        gx_o = gx[..., 3 * H:4 * H]

    # Folded decoder weights, loaded once (resident across the unrolled loop).
    wh = wh_ref[...]
    wx = wx_ref[...]
    bout = bout_ref[...]

    # LSTM state carried in vregs (no VMEM scratch traffic on the serial path).
    h = jnp.zeros((Bb, H), jnp.float32)
    c = jnp.zeros((Bb, H), jnp.float32)

    outs = []
    # Fully unrolled recurrence: S is small and static.
    # TODO(synk): chunked lax.fori_loop over time-chunks at real S.
    for t in range(S):
        if pack_gates:
            gates = gx[t] + jnp.dot(h, whh_p,
                                    preferred_element_type=jnp.float32)
            i = jax.nn.sigmoid(gates[:, 0 * H:1 * H])
            f = jax.nn.sigmoid(gates[:, 1 * H:2 * H])
            g = jnp.tanh(gates[:, 2 * H:3 * H])
            o = jax.nn.sigmoid(gates[:, 3 * H:4 * H])
        else:
            i = jax.nn.sigmoid(gx_i[t] + jnp.dot(
                h, whh_i, preferred_element_type=jnp.float32))
            f = jax.nn.sigmoid(gx_f[t] + jnp.dot(
                h, whh_f, preferred_element_type=jnp.float32))
            g = jnp.tanh(gx_g[t] + jnp.dot(
                h, whh_g, preferred_element_type=jnp.float32))
            o = jax.nn.sigmoid(gx_o[t] + jnp.dot(
                h, whh_o, preferred_element_type=jnp.float32))
        c = f * c + i * g
        h = o * jnp.tanh(c)
        # Fused MQ-decoder for this timestep's rows (consumer of h, off the
        # serial h->h dependence chain, so it overlaps with the recurrence).
        outs.append(jnp.dot(h, wh, preferred_element_type=jnp.float32)
                    + jnp.dot(xf_ref[t], wx,
                              preferred_element_type=jnp.float32)
                    + bout)

    # Single lane-dense store of the whole (S, Bb, KQp) block.
    out_ref[...] = jnp.stack(outs, axis=0)


# ----------------------------------------------------------------------------
# Host-side, once-per-parameter-set weight preparation (hoisted out of the
# per-call path).
# ----------------------------------------------------------------------------
def prepare_params(params, input_size, embed_size, hidden_size, context_size,
                   horizon, n_quantiles):
    H, K, E, C, Q = hidden_size, horizon, embed_size, context_size, n_quantiles

    wih_t = params["w_ih"].T                              # (In, 4H)
    wih_y = wih_t[:input_size, :]
    wih_x = wih_t[input_size:, :]
    b = (params["b_ih"] + params["b_hh"])[None, :]        # (1, 4H)

    if H % 128 == 0:
        whh = params["w_hh"].T                            # packed (H, 4H)
    else:
        # Pre-split per gate (acting as h @ whh[g]).
        whh = jnp.transpose(params["w_hh"].reshape(4, H, H), (0, 2, 1))

    # ---- fold global_mlp + local_mlp (both pure Linear) into one affine map:
    #        out = h @ W_h + x_d.flat @ W_x + b_out
    # Valid ONLY while both decoder layers stay purely linear.
    wg_t = params["wg"].T                                 # (H + K*E, (K+1)*C)
    wg_h, wg_x = wg_t[:H, :], wg_t[H:, :]
    wl_t = params["wl"].T                                 # (2C + E, Q)
    wl_ct, wl_ca, wl_x = wl_t[:C, :], wl_t[C:2 * C, :], wl_t[2 * C:, :]

    eye_k = jnp.eye(K, dtype=jnp.float32)
    w1_ct = jnp.einsum("kl,cq->kclq", eye_k, wl_ct).reshape(K * C, K * Q)
    w1_ca = jnp.tile(wl_ca, (1, K))                       # (C, K*Q)
    W1 = jnp.concatenate([w1_ct, w1_ca], axis=0)          # ((K+1)*C, K*Q)
    W2 = jnp.einsum("kl,eq->kelq", eye_k, wl_x).reshape(K * E, K * Q)

    W_h = wg_h @ W1                                       # (H, K*Q)
    W_x = wg_x @ W1 + W2                                  # (K*E, K*Q)
    b_out = params["bg"] @ W1 + jnp.tile(params["bl"], K) # (K*Q,)

    # Zero-pad the output columns to a multiple of 128 -> unmasked vst.
    KQ = K * Q
    KQp = ((KQ + 127) // 128) * 128
    if KQp != KQ:
        W_h = jnp.pad(W_h, ((0, 0), (0, KQp - KQ)))
        W_x = jnp.pad(W_x, ((0, 0), (0, KQp - KQ)))
        b_out = jnp.pad(b_out, (0, KQp - KQ))

    return {"wih_y": wih_y, "wih_x": wih_x, "b": b, "whh": whh,
            "W_h": W_h, "W_x": W_x, "b_out": b_out[None, :]}


def _batch_block(B):
    # >= 2 grid steps when possible (feeds v7x's 2 TensorCores through the
    # "parallel" axis) while keeping the blocked sublane dim either 8-aligned
    # or equal to the full batch.
    if B % 16 == 0:
        return B // 2
    if B % 8 == 0 and B > 8:
        return 8
    return B


# ----------------------------------------------------------------------------
# Forward wrapper: one fused pallas_call, time-major rows, tiny output
# transpose only.
# ----------------------------------------------------------------------------
@functools.partial(jax.jit, static_argnames=("horizon", "n_quantiles"))
def mqrnn_forward(prepped, y_e, x_e, x_d, *, horizon, n_quantiles):
    B, S, _ = y_e.shape
    K, Q = horizon, n_quantiles
    E = x_e.shape[-1]

    # Time-major activations (small; the former big hidden_states transpose is
    # gone because the decoder runs inside the same kernel).
    y_t = jnp.transpose(y_e, (1, 0, 2))                    # (S, B, in)
    x_t = jnp.transpose(x_e, (1, 0, 2))                    # (S, B, E)
    xf_t = jnp.transpose(x_d, (1, 0, 2, 3)).reshape(S, B, K * E)

    KQp = prepped["W_h"].shape[-1]
    Bb = _batch_block(B)
    grid = (B // Bb,)

    def batch_spec(arr):
        shp = (arr.shape[0], Bb) + arr.shape[2:]
        return pl.BlockSpec(
            shp, lambda bidx, nd=arr.ndim: (0, bidx) + (0,) * (nd - 2))

    def const_spec(arr):
        # Weights: constant index_map -> stay VMEM-resident across grid steps.
        return pl.BlockSpec(arr.shape, lambda bidx, nd=arr.ndim: (0,) * nd)

    out = pl.pallas_call(
        mqrnn_kernel,
        out_shape=jax.ShapeDtypeStruct((S, B, KQp), jnp.float32),
        grid=grid,
        in_specs=[batch_spec(y_t), batch_spec(x_t), batch_spec(xf_t),
                  const_spec(prepped["wih_y"]), const_spec(prepped["wih_x"]),
                  const_spec(prepped["b"]), const_spec(prepped["whh"]),
                  const_spec(prepped["W_h"]), const_spec(prepped["W_x"]),
                  const_spec(prepped["b_out"])],
        out_specs=pl.BlockSpec((S, Bb, KQp), lambda bidx: (0, bidx, 0)),
        compiler_params=pltpu.CompilerParams(
            dimension_semantics=("parallel",)),
    )(y_t, x_t, xf_t, prepped["wih_y"], prepped["wih_x"], prepped["b"],
      prepped["whh"], prepped["W_h"], prepped["W_x"], prepped["b_out"])

    # Slice away the lane padding, then the single tiny output transpose.
    out = out[:, :, :K * Q]
    return jnp.transpose(out, (1, 0, 2)).reshape(B, S, K, Q)


# ----------------------------------------------------------------------------
# Pure-JAX reference (mirrors the PyTorch module, training path).
# ----------------------------------------------------------------------------
def mqrnn_reference(params, y_e, x_e, x_d, horizon, context_size):
    x = jnp.concatenate([y_e, x_e], axis=-1)              # (B, S, In)
    B, S, _ = x.shape
    H = params["w_hh"].shape[1]
    w_ih, w_hh = params["w_ih"], params["w_hh"]
    b = params["b_ih"] + params["b_hh"]

    def step(carry, x_t):
        h, c = carry
        gates = x_t @ w_ih.T + h @ w_hh.T + b
        i, f, g, o = jnp.split(gates, 4, axis=-1)
        i, f, o = jax.nn.sigmoid(i), jax.nn.sigmoid(f), jax.nn.sigmoid(o)
        g = jnp.tanh(g)
        c = f * c + i * g
        h = o * jnp.tanh(c)
        return (h, c), h

    h0 = jnp.zeros((B, H), jnp.float32)
    c0 = jnp.zeros((B, H), jnp.float32)
    _, hs = jax.lax.scan(step, (h0, c0), jnp.transpose(x, (1, 0, 2)))
    hidden_states = jnp.transpose(hs, (1, 0, 2))          # (B, S, H)

    K, C = horizon, context_size
    xf_flat = x_d.reshape(*x_d.shape[:-2], -1)
    global_in = jnp.concatenate([hidden_states, xf_flat], axis=-1)
    contexts = global_in @ params["wg"].T + params["bg"]
    contexts = contexts.reshape(*contexts.shape[:-1], K + 1, C)
    c_t = contexts[..., :K, :]
    c_a = jnp.broadcast_to(contexts[..., K:, :], c_t.shape)
    local_in = jnp.concatenate([c_t, c_a, x_d], axis=-1)
    return local_in @ params["wl"].T + params["bl"]


if __name__ == "__main__":
    # Small shapes consistent with the module.
    B, S = 2, 8
    input_size, embed_size = 1, 4
    hidden_size, context_size = 32, 8
    horizon = 4
    quantiles = [0.1, 0.5, 0.9]
    Q = len(quantiles)

    key = jax.random.PRNGKey(0)
    ks = jax.random.split(key, 12)

    def u(k, shape, scale=0.1):
        return jax.random.uniform(k, shape, jnp.float32, -scale, scale)

    In = input_size + embed_size
    params = {
        # Encoder LSTM
        "w_ih": u(ks[0], (4 * hidden_size, In)),
        "w_hh": u(ks[1], (4 * hidden_size, hidden_size)),
        "b_ih": u(ks[2], (4 * hidden_size,)),
        "b_hh": u(ks[3], (4 * hidden_size,)),
        # Decoder global_mlp: Linear(H + E*K -> C*(K+1))
        "wg": u(ks[4], (context_size * (horizon + 1),
                        hidden_size + embed_size * horizon)),
        "bg": u(ks[5], (context_size * (horizon + 1),)),
        # Decoder local_mlp: Linear(2C + E -> Q)
        "wl": u(ks[6], (Q, context_size * 2 + embed_size)),
        "bl": u(ks[7], (Q,)),
    }

    y_e = jax.random.normal(ks[8], (B, S, input_size), jnp.float32)
    x_e = jax.random.normal(ks[9], (B, S, embed_size), jnp.float32)
    # Training path: x_d carries the seq dimension (see NOTE at top of file).
    x_d = jax.random.normal(ks[10], (B, S, horizon, embed_size), jnp.float32)

    prepped = prepare_params(params, input_size, embed_size, hidden_size,
                             context_size, horizon, Q)
    out = mqrnn_forward(prepped, y_e, x_e, x_d, horizon=horizon,
                        n_quantiles=Q)
    out = jax.block_until_ready(out)

    ref = mqrnn_reference(params, y_e, x_e, x_d, horizon, context_size)
    assert out.shape == (B, S, horizon, Q), out.shape
    assert jnp.allclose(out, ref, atol=2e-3, rtol=2e-3), (
        float(jnp.max(jnp.abs(out - ref))))

    print("KERNEL_OK")
</pallas_src>

<mosaic_0001>
module attributes {stable_mosaic.version = 11 : i64} {
  func.func @mqrnn_kernel(%arg0: i32, %arg1: memref<8x2x1xf32, #tpu.memory_space<vmem>>, %arg2: memref<8x2x4xf32, #tpu.memory_space<vmem>>, %arg3: memref<8x2x16xf32, #tpu.memory_space<vmem>>, %arg4: memref<1x128xf32, #tpu.memory_space<vmem>>, %arg5: memref<4x128xf32, #tpu.memory_space<vmem>>, %arg6: memref<1x128xf32, #tpu.memory_space<vmem>>, %arg7: memref<4x32x32xf32, #tpu.memory_space<vmem>>, %arg8: memref<32x128xf32, #tpu.memory_space<vmem>>, %arg9: memref<16x128xf32, #tpu.memory_space<vmem>>, %arg10: memref<1x128xf32, #tpu.memory_space<vmem>>, %arg11: memref<8x2x128xf32, #tpu.memory_space<vmem>>) attributes {dimension_semantics = [#tpu.dimension_semantics<parallel>], iteration_bounds = array<i64: 1>, scalar_prefetch = 0 : i64, scratch_operands = 0 : i64, tpu.core_type = #tpu.core_type<tc>, window_params = [{transform_indices = @transform_0, window_bounds = array<i64: 8, 2, 1>}, {transform_indices = @transform_1, window_bounds = array<i64: 8, 2, 4>}, {transform_indices = @transform_2, window_bounds = array<i64: 8, 2, 16>}, {pipeline_mode = #tpu.pipeline_mode<synchronous>, transform_indices = @transform_3, window_bounds = array<i64: 1, 128>}, {pipeline_mode = #tpu.pipeline_mode<synchronous>, transform_indices = @transform_4, window_bounds = array<i64: 4, 128>}, {pipeline_mode = #tpu.pipeline_mode<synchronous>, transform_indices = @transform_5, window_bounds = array<i64: 1, 128>}, {pipeline_mode = #tpu.pipeline_mode<synchronous>, transform_indices = @transform_6, window_bounds = array<i64: 4, 32, 32>}, {pipeline_mode = #tpu.pipeline_mode<synchronous>, transform_indices = @transform_7, window_bounds = array<i64: 32, 128>}, {pipeline_mode = #tpu.pipeline_mode<synchronous>, transform_indices = @transform_8, window_bounds = array<i64: 16, 128>}, {pipeline_mode = #tpu.pipeline_mode<synchronous>, transform_indices = @transform_9, window_bounds = array<i64: 1, 128>}, {transform_indices = @transform_10, window_bounds = array<i64: 8, 2, 128>}]} {
    %c0 = arith.constant 0 : index
    %c0_0 = arith.constant 0 : index
    %c0_1 = arith.constant 0 : index
    %0 = vector.load %arg1[%c0, %c0_0, %c0_1] : memref<8x2x1xf32, #tpu.memory_space<vmem>>, vector<8x2x1xf32>
    %c0_2 = arith.constant 0 : index
    %c0_3 = arith.constant 0 : index
    %1 = vector.load %arg4[%c0_2, %c0_3] : memref<1x128xf32, #tpu.memory_space<vmem>>, vector<1x128xf32>
    %2 = vector.shape_cast %1 : vector<1x128xf32> to vector<1x1x128xf32>
    %3 = vector.broadcast %0 : vector<8x2x1xf32> to vector<8x2x128xf32>
    %4 = vector.broadcast %2 : vector<1x1x128xf32> to vector<8x2x128xf32>
    %5 = arith.mulf %3, %4 : vector<8x2x128xf32>
    %c0_4 = arith.constant 0 : index
    %c0_5 = arith.constant 0 : index
    %c0_6 = arith.constant 0 : index
    %6 = vector.load %arg2[%c0_4, %c0_5, %c0_6] : memref<8x2x4xf32, #tpu.memory_space<vmem>>, vector<8x2x4xf32>
    %c0_7 = arith.constant 0 : index
    %c0_8 = arith.constant 0 : index
    %7 = vector.load %arg5[%c0_7, %c0_8] : memref<4x128xf32, #tpu.memory_space<vmem>>, vector<4x128xf32>
    %8 = vector.extract_strided_slice %6 {offsets = [0, 0, 0], sizes = [8, 2, 1], strides = [1, 1, 1]} : vector<8x2x4xf32> to vector<8x2x1xf32>
    %9 = vector.extract_strided_slice %7 {offsets = [0, 0], sizes = [1, 128], strides = [1, 1]} : vector<4x128xf32> to vector<1x128xf32>
    %10 = vector.shape_cast %9 : vector<1x128xf32> to vector<1x1x128xf32>
    %11 = vector.broadcast %8 : vector<8x2x1xf32> to vector<8x2x128xf32>
    %12 = vector.broadcast %10 : vector<1x1x128xf32> to vector<8x2x128xf32>
    %13 = arith.mulf %11, %12 : vector<8x2x128xf32>
    %14 = vector.extract_strided_slice %6 {offsets = [0, 0, 1], sizes = [8, 2, 1], strides = [1, 1, 1]} : vector<8x2x4xf32> to vector<8x2x1xf32>
    %15 = vector.extract_strided_slice %7 {offsets = [1, 0], sizes = [1, 128], strides = [1, 1]} : vector<4x128xf32> to vector<1x128xf32>
    %16 = vector.shape_cast %15 : vector<1x128xf32> to vector<1x1x128xf32>
    %17 = vector.broadcast %14 : vector<8x2x1xf32> to vector<8x2x128xf32>
    %18 = vector.broadcast %16 : vector<1x1x128xf32> to vector<8x2x128xf32>
    %19 = arith.mulf %17, %18 : vector<8x2x128xf32>
    %20 = arith.addf %13, %19 : vector<8x2x128xf32>
    %21 = vector.extract_strided_slice %6 {offsets = [0, 0, 2], sizes = [8, 2, 1], strides = [1, 1, 1]} : vector<8x2x4xf32> to vector<8x2x1xf32>
    %22 = vector.extract_strided_slice %7 {offsets = [2, 0], sizes = [1, 128], strides = [1, 1]} : vector<4x128xf32> to vector<1x128xf32>
    %23 = vector.shape_cast %22 : vector<1x128xf32> to vector<1x1x128xf32>
    %24 = vector.broadcast %21 : vector<8x2x1xf32> to vector<8x2x128xf32>
    %25 = vector.broadcast %23 : vector<1x1x128xf32> to vector<8x2x128xf32>
    %26 = arith.mulf %24, %25 : vector<8x2x128xf32>
    %27 = arith.addf %20, %26 : vector<8x2x128xf32>
    %28 = vector.extract_strided_slice %6 {offsets = [0, 0, 3], sizes = [8, 2, 1], strides = [1, 1, 1]} : vector<8x2x4xf32> to vector<8x2x1xf32>
    %29 = vector.extract_strided_slice %7 {offsets = [3, 0], sizes = [1, 128], strides = [1, 1]} : vector<4x128xf32> to vector<1x128xf32>
    %30 = vector.shape_cast %29 : vector<1x128xf32> to vector<1x1x128xf32>
    %31 = vector.broadcast %28 : vector<8x2x1xf32> to vector<8x2x128xf32>
    %32 = vector.broadcast %30 : vector<1x1x128xf32> to vector<8x2x128xf32>
    %33 = arith.mulf %31, %32 : vector<8x2x128xf32>
    %34 = arith.addf %27, %33 : vector<8x2x128xf32>
    %35 = arith.addf %5, %34 : vector<8x2x128xf32>
    %c0_9 = arith.constant 0 : index
    %c0_10 = arith.constant 0 : index
    %36 = vector.load %arg6[%c0_9, %c0_10] : memref<1x128xf32, #tpu.memory_space<vmem>>, vector<1x128xf32>
    %37 = vector.shape_cast %36 : vector<1x128xf32> to vector<1x1x128xf32>
    %38 = vector.broadcast %37 : vector<1x1x128xf32> to vector<8x2x128xf32>
    %39 = arith.addf %35, %38 : vector<8x2x128xf32>
    %c0_11 = arith.constant 0 : index
    %c0_12 = arith.constant 0 : index
    %c0_13 = arith.constant 0 : index
    %40 = vector.load %arg7[%c0_11, %c0_12, %c0_13] : memref<4x32x32xf32, #tpu.memory_space<vmem>>, vector<1x32x32xf32>
    %41 = vector.shape_cast %40 : vector<1x32x32xf32> to vector<32x32xf32>
    %c1 = arith.constant 1 : index
    %c0_14 = arith.constant 0 : index
    %c0_15 = arith.constant 0 : index
    %42 = vector.load %arg7[%c1, %c0_14, %c0_15] : memref<4x32x32xf32, #tpu.memory_space<vmem>>, vector<1x32x32xf32>
    %43 = vector.shape_cast %42 : vector<1x32x32xf32> to vector<32x32xf32>
    %c2 = arith.constant 2 : index
    %c0_16 = arith.constant 0 : index
    %c0_17 = arith.constant 0 : index
    %44 = vector.load %arg7[%c2, %c0_16, %c0_17] : memref<4x32x32xf32, #tpu.memory_space<vmem>>, vector<1x32x32xf32>
    %45 = vector.shape_cast %44 : vector<1x32x32xf32> to vector<32x32xf32>
    %c3 = arith.constant 3 : index
    %c0_18 = arith.constant 0 : index
    %c0_19 = arith.constant 0 : index
    %46 = vector.load %arg7[%c3, %c0_18, %c0_19] : memref<4x32x32xf32, #tpu.memory_space<vmem>>, vector<1x32x32xf32>
    %47 = vector.shape_cast %46 : vector<1x32x32xf32> to vector<32x32xf32>
    %48 = vector.extract_strided_slice %39 {offsets = [0, 0, 0], sizes = [8, 2, 32], strides = [1, 1, 1]} : vector<8x2x128xf32> to vector<8x2x32xf32>
    %49 = vector.extract_strided_slice %39 {offsets = [0, 0, 32], sizes = [8, 2, 32], strides = [1, 1, 1]} : vector<8x2x128xf32> to vector<8x2x32xf32>
    %50 = vector.extract_strided_slice %39 {offsets = [0, 0, 64], sizes = [8, 2, 32], strides = [1, 1, 1]} : vector<8x2x128xf32> to vector<8x2x32xf32>
    %51 = vector.extract_strided_slice %39 {offsets = [0, 0, 96], sizes = [8, 2, 32], strides = [1, 1, 1]} : vector<8x2x128xf32> to vector<8x2x32xf32>
    %c0_20 = arith.constant 0 : index
    %c0_21 = arith.constant 0 : index
    %52 = vector.load %arg8[%c0_20, %c0_21] : memref<32x128xf32, #tpu.memory_space<vmem>>, vector<32x128xf32>
    %c0_22 = arith.constant 0 : index
    %c0_23 = arith.constant 0 : index
    %53 = vector.load %arg9[%c0_22, %c0_23] : memref<16x128xf32, #tpu.memory_space<vmem>>, vector<16x128xf32>
    %c0_24 = arith.constant 0 : index
    %c0_25 = arith.constant 0 : index
    %54 = vector.load %arg10[%c0_24, %c0_25] : memref<1x128xf32, #tpu.memory_space<vmem>>, vector<1x128xf32>
    %cst = arith.constant 0.000000e+00 : f32
    %55 = vector.broadcast %cst : f32 to vector<2x32xf32>
    %cst_26 = arith.constant 0.000000e+00 : f32
    %56 = vector.broadcast %cst_26 : f32 to vector<2x32xf32>
    %57 = vector.extract_strided_slice %48 {offsets = [0, 0, 0], sizes = [1, 2, 32], strides = [1, 1, 1]} : vector<8x2x32xf32> to vector<1x2x32xf32>
    %58 = vector.shape_cast %57 : vector<1x2x32xf32> to vector<2x32xf32>
    %cst_27 = arith.constant dense<0.000000e+00> : vector<2x32xf32>
    %59 = tpu.matmul %55, %41, %cst_27 {dimension_numbers = #tpu.dot_dimension_numbers<[1], [0], [0], [1], [0, 0, 1, 1], [], []>} : vector<2x32xf32>, vector<32x32xf32>, vector<2x32xf32> -> vector<2x32xf32>
    %60 = arith.addf %58, %59 : vector<2x32xf32>
    %61 = arith.negf %60 : vector<2x32xf32>
    %62 = math.exp %61 : vector<2x32xf32>
    %cst_28 = arith.constant 1.000000e+00 : f32
    %63 = vector.broadcast %cst_28 : f32 to vector<2x32xf32>
    %64 = arith.addf %63, %62 : vector<2x32xf32>
    %65 = arith.divf %63, %64 : vector<2x32xf32>
    %66 = vector.extract_strided_slice %49 {offsets = [0, 0, 0], sizes = [1, 2, 32], strides = [1, 1, 1]} : vector<8x2x32xf32> to vector<1x2x32xf32>
    %67 = vector.shape_cast %66 : vector<1x2x32xf32> to vector<2x32xf32>
    %cst_29 = arith.constant dense<0.000000e+00> : vector<2x32xf32>
    %68 = tpu.matmul %55, %43, %cst_29 {dimension_numbers = #tpu.dot_dimension_numbers<[1], [0], [0], [1], [0, 0, 1, 1], [], []>} : vector<2x32xf32>, vector<32x32xf32>, vector<2x32xf32> -> vector<2x32xf32>
    %69 = arith.addf %67, %68 : vector<2x32xf32>
    %70 = arith.negf %69 : vector<2x32xf32>
    %71 = math.exp %70 : vector<2x32xf32>
    %cst_30 = arith.constant 1.000000e+00 : f32
    %72 = vector.broadcast %cst_30 : f32 to vector<2x32xf32>
    %73 = arith.addf %72, %71 : vector<2x32xf32>
    %74 = arith.divf %72, %73 : vector<2x32xf32>
    %75 = vector.extract_strided_slice %50 {offsets = [0, 0, 0], sizes = [1, 2, 32], strides = [1, 1, 1]} : vector<8x2x32xf32> to vector<1x2x32xf32>
    %76 = vector.shape_cast %75 : vector<1x2x32xf32> to vector<2x32xf32>
    %cst_31 = arith.constant dense<0.000000e+00> : vector<2x32xf32>
    %77 = tpu.matmul %55, %45, %cst_31 {dimension_numbers = #tpu.dot_dimension_numbers<[1], [0], [0], [1], [0, 0, 1, 1], [], []>} : vector<2x32xf32>, vector<32x32xf32>, vector<2x32xf32> -> vector<2x32xf32>
    %78 = arith.addf %76, %77 : vector<2x32xf32>
    %79 = math.tanh %78 : vector<2x32xf32>
    %80 = vector.extract_strided_slice %51 {offsets = [0, 0, 0], sizes = [1, 2, 32], strides = [1, 1, 1]} : vector<8x2x32xf32> to vector<1x2x32xf32>
    %81 = vector.shape_cast %80 : vector<1x2x32xf32> to vector<2x32xf32>
    %cst_32 = arith.constant dense<0.000000e+00> : vector<2x32xf32>
    %82 = tpu.matmul %55, %47, %cst_32 {dimension_numbers = #tpu.dot_dimension_numbers<[1], [0], [0], [1], [0, 0, 1, 1], [], []>} : vector<2x32xf32>, vector<32x32xf32>, vector<2x32xf32> -> vector<2x32xf32>
    %83 = arith.addf %81, %82 : vector<2x32xf32>
    %84 = arith.negf %83 : vector<2x32xf32>
    %85 = math.exp %84 : vector<2x32xf32>
    %cst_33 = arith.constant 1.000000e+00 : f32
    %86 = vector.broadcast %cst_33 : f32 to vector<2x32xf32>
    %87 = arith.addf %86, %85 : vector<2x32xf32>
    %88 = arith.divf %86, %87 : vector<2x32xf32>
    %89 = arith.mulf %74, %56 : vector<2x32xf32>
    %90 = arith.mulf %65, %79 : vector<2x32xf32>
    %91 = arith.addf %89, %90 : vector<2x32xf32>
    %92 = math.tanh %91 : vector<2x32xf32>
    %93 = arith.mulf %88, %92 : vector<2x32xf32>
    %cst_34 = arith.constant dense<0.000000e+00> : vector<2x128xf32>
    %94 = tpu.matmul %93, %52, %cst_34 {dimension_numbers = #tpu.dot_dimension_numbers<[1], [0], [0], [1], [0, 0, 1, 1], [], []>} : vector<2x32xf32>, vector<32x128xf32>, vector<2x128xf32> -> vector<2x128xf32>
    %c0_35 = arith.constant 0 : index
    %c0_36 = arith.constant 0 : index
    %c0_37 = arith.constant 0 : index
    %95 = vector.load %arg3[%c0_35, %c0_36, %c0_37] : memref<8x2x16xf32, #tpu.memory_space<vmem>>, vector<1x2x16xf32>
    %96 = vector.shape_cast %95 : vector<1x2x16xf32> to vector<2x16xf32>
    %cst_38 = arith.constant dense<0.000000e+00> : vector<2x128xf32>
    %97 = tpu.matmul %96, %53, %cst_38 {dimension_numbers = #tpu.dot_dimension_numbers<[1], [0], [0], [1], [0, 0, 1, 1], [], []>} : vector<2x16xf32>, vector<16x128xf32>, vector<2x128xf32> -> vector<2x128xf32>
    %98 = arith.addf %94, %97 : vector<2x128xf32>
    %99 = vector.broadcast %54 : vector<1x128xf32> to vector<2x128xf32>
    %100 = arith.addf %98, %99 : vector<2x128xf32>
    %101 = vector.extract_strided_slice %48 {offsets = [1, 0, 0], sizes = [1, 2, 32], strides = [1, 1, 1]} : vector<8x2x32xf32> to vector<1x2x32xf32>
    %102 = vector.shape_cast %101 : vector<1x2x32xf32> to vector<2x32xf32>
    %cst_39 = arith.constant dense<0.000000e+00> : vector<2x32xf32>
    %103 = tpu.matmul %93, %41, %cst_39 {dimension_numbers = #tpu.dot_dimension_numbers<[1], [0], [0], [1], [0, 0, 1, 1], [], []>} : vector<2x32xf32>, vector<32x32xf32>, vector<2x32xf32> -> vector<2x32xf32>
    %104 = arith.addf %102, %103 : vector<2x32xf32>
    %105 = arith.negf %104 : vector<2x32xf32>
    %106 = math.exp %105 : vector<2x32xf32>
    %cst_40 = arith.constant 1.000000e+00 : f32
    %107 = vector.broadcast %cst_40 : f32 to vector<2x32xf32>
    %108 = arith.addf %107, %106 : vector<2x32xf32>
    %109 = arith.divf %107, %108 : vector<2x32xf32>
    %110 = vector.extract_strided_slice %49 {offsets = [1, 0, 0], sizes = [1, 2, 32], strides = [1, 1, 1]} : vector<8x2x32xf32> to vector<1x2x32xf32>
    %111 = vector.shape_cast %110 : vector<1x2x32xf32> to vector<2x32xf32>
    %cst_41 = arith.constant dense<0.000000e+00> : vector<2x32xf32>
    %112 = tpu.matmul %93, %43, %cst_41 {dimension_numbers = #tpu.dot_dimension_numbers<[1], [0], [0], [1], [0, 0, 1, 1], [], []>} : vector<2x32xf32>, vector<32x32xf32>, vector<2x32xf32> -> vector<2x32xf32>
    %113 = arith.addf %111, %112 : vector<2x32xf32>
    %114 = arith.negf %113 : vector<2x32xf32>
    %115 = math.exp %114 : vector<2x32xf32>
    %cst_42 = arith.constant 1.000000e+00 : f32
    %116 = vector.broadcast %cst_42 : f32 to vector<2x32xf32>
    %117 = arith.addf %116, %115 : vector<2x32xf32>
    %118 = arith.divf %116, %117 : vector<2x32xf32>
    %119 = vector.extract_strided_slice %50 {offsets = [1, 0, 0], sizes = [1, 2, 32], strides = [1, 1, 1]} : vector<8x2x32xf32> to vector<1x2x32xf32>
    %120 = vector.shape_cast %119 : vector<1x2x32xf32> to vector<2x32xf32>
    %cst_43 = arith.constant dense<0.000000e+00> : vector<2x32xf32>
    %121 = tpu.matmul %93, %45, %cst_43 {dimension_numbers = #tpu.dot_dimension_numbers<[1], [0], [0], [1], [0, 0, 1, 1], [], []>} : vector<2x32xf32>, vector<32x32xf32>, vector<2x32xf32> -> vector<2x32xf32>
    %122 = arith.addf %120, %121 : vector<2x32xf32>
    %123 = math.tanh %122 : vector<2x32xf32>
    %124 = vector.extract_strided_slice %51 {offsets = [1, 0, 0], sizes = [1, 2, 32], strides = [1, 1, 1]} : vector<8x2x32xf32> to vector<1x2x32xf32>
    %125 = vector.shape_cast %124 : vector<1x2x32xf32> to vector<2x32xf32>
    %cst_44 = arith.constant dense<0.000000e+00> : vector<2x32xf32>
    %126 = tpu.matmul %93, %47, %cst_44 {dimension_numbers = #tpu.dot_dimension_numbers<[1], [0], [0], [1], [0, 0, 1, 1], [], []>} : vector<2x32xf32>, vector<32x32xf32>, vector<2x32xf32> -> vector<2x32xf32>
    %127 = arith.addf %125, %126 : vector<2x32xf32>
    %128 = arith.negf %127 : vector<2x32xf32>
    %129 = math.exp %128 : vector<2x32xf32>
    %cst_45 = arith.constant 1.000000e+00 : f32
    %130 = vector.broadcast %cst_45 : f32 to vector<2x32xf32>
    %131 = arith.addf %130, %129 : vector<2x32xf32>
    %132 = arith.divf %130, %131 : vector<2x32xf32>
    %133 = arith.mulf %118, %91 : vector<2x32xf32>
    %134 = arith.mulf %109, %123 : vector<2x32xf32>
    %135 = arith.addf %133, %134 : vector<2x32xf32>
    %136 = math.tanh %135 : vector<2x32xf32>
    %137 = arith.mulf %132, %136 : vector<2x32xf32>
    %cst_46 = arith.constant dense<0.000000e+00> : vector<2x128xf32>
    %138 = tpu.matmul %137, %52, %cst_46 {dimension_numbers = #tpu.dot_dimension_numbers<[1], [0], [0], [1], [0, 0, 1, 1], [], []>} : vector<2x32xf32>, vector<32x128xf32>, vector<2x128xf32> -> vector<2x128xf32>
    %c1_47 = arith.constant 1 : index
    %c0_48 = arith.constant 0 : index
    %c0_49 = arith.constant 0 : index
    %139 = vector.load %arg3[%c1_47, %c0_48, %c0_49] : memref<8x2x16xf32, #tpu.memory_space<vmem>>, vector<1x2x16xf32>
    %140 = vector.shape_cast %139 : vector<1x2x16xf32> to vector<2x16xf32>
    %cst_50 = arith.constant dense<0.000000e+00> : vector<2x128xf32>
    %141 = tpu.matmul %140, %53, %cst_50 {dimension_numbers = #tpu.dot_dimension_numbers<[1], [0], [0], [1], [0, 0, 1, 1], [], []>} : vector<2x16xf32>, vector<16x128xf32>, vector<2x128xf32> -> vector<2x128xf32>
    %142 = arith.addf %138, %141 : vector<2x128xf32>
    %143 = vector.broadcast %54 : vector<1x128xf32> to vector<2x128xf32>
    %144 = arith.addf %142, %143 : vector<2x128xf32>
    %145 = vector.extract_strided_slice %48 {offsets = [2, 0, 0], sizes = [1, 2, 32], strides = [1, 1, 1]} : vector<8x2x32xf32> to vector<1x2x32xf32>
    %146 = vector.shape_cast %145 : vector<1x2x32xf32> to vector<2x32xf32>
    %cst_51 = arith.constant dense<0.000000e+00> : vector<2x32xf32>
    %147 = tpu.matmul %137, %41, %cst_51 {dimension_numbers = #tpu.dot_dimension_numbers<[1], [0], [0], [1], [0, 0, 1, 1], [], []>} : vector<2x32xf32>, vector<32x32xf32>, vector<2x32xf32> -> vector<2x32xf32>
    %148 = arith.addf %146, %147 : vector<2x32xf32>
    %149 = arith.negf %148 : vector<2x32xf32>
    %150 = math.exp %149 : vector<2x32xf32>
    %cst_52 = arith.constant 1.000000e+00 : f32
    %151 = vector.broadcast %cst_52 : f32 to vector<2x32xf32>
    %152 = arith.addf %151, %150 : vector<2x32xf32>
    %153 = arith.divf %151, %152 : vector<2x32xf32>
    %154 = vector.extract_strided_slice %49 {offsets = [2, 0, 0], sizes = [1, 2, 32], strides = [1, 1, 1]} : vector<8x2x32xf32> to vector<1x2x32xf32>
    %155 = vector.shape_cast %154 : vector<1x2x32xf32> to vector<2x32xf32>
    %cst_53 = arith.constant dense<0.000000e+00> : vector<2x32xf32>
    %156 = tpu.matmul %137, %43, %cst_53 {dimension_numbers = #tpu.dot_dimension_numbers<[1], [0], [0], [1], [0, 0, 1, 1], [], []>} : vector<2x32xf32>, vector<32x32xf32>, vector<2x32xf32> -> vector<2x32xf32>
    %157 = arith.addf %155, %156 : vector<2x32xf32>
    %158 = arith.negf %157 : vector<2x32xf32>
    %159 = math.exp %158 : vector<2x32xf32>
    %cst_54 = arith.constant 1.000000e+00 : f32
    %160 = vector.broadcast %cst_54 : f32 to vector<2x32xf32>
    %161 = arith.addf %160, %159 : vector<2x32xf32>
    %162 = arith.divf %160, %161 : vector<2x32xf32>
    %163 = vector.extract_strided_slice %50 {offsets = [2, 0, 0], sizes = [1, 2, 32], strides = [1, 1, 1]} : vector<8x2x32xf32> to vector<1x2x32xf32>
    %164 = vector.shape_cast %163 : vector<1x2x32xf32> to vector<2x32xf32>
    %cst_55 = arith.constant dense<0.000000e+00> : vector<2x32xf32>
    %165 = tpu.matmul %137, %45, %cst_55 {dimension_numbers = #tpu.dot_dimension_numbers<[1], [0], [0], [1], [0, 0, 1, 1], [], []>} : vector<2x32xf32>, vector<32x32xf32>, vector<2x32xf32> -> vector<2x32xf32>
    %166 = arith.addf %164, %165 : vector<2x32xf32>
    %167 = math.tanh %166 : vector<2x32xf32>
    %168 = vector.extract_strided_slice %51 {offsets = [2, 0, 0], sizes = [1, 2, 32], strides = [1, 1, 1]} : vector<8x2x32xf32> to vector<1x2x32xf32>
    %169 = vector.shape_cast %168 : vector<1x2x32xf32> to vector<2x32xf32>
    %cst_56 = arith.constant dense<0.000000e+00> : vector<2x32xf32>
    %170 = tpu.matmul %137, %47, %cst_56 {dimension_numbers = #tpu.dot_dimension_numbers<[1], [0], [0], [1], [0, 0, 1, 1], [], []>} : vector<2x32xf32>, vector<32x32xf32>, vector<2x32xf32> -> vector<2x32xf32>
    %171 = arith.addf %169, %170 : vector<2x32xf32>
    %172 = arith.negf %171 : vector<2x32xf32>
    %173 = math.exp %172 : vector<2x32xf32>
    %cst_57 = arith.constant 1.000000e+00 : f32
    %174 = vector.broadcast %cst_57 : f32 to vector<2x32xf32>
    %175 = arith.addf %174, %173 : vector<2x32xf32>
    %176 = arith.divf %174, %175 : vector<2x32xf32>
    %177 = arith.mulf %162, %135 : vector<2x32xf32>
    %178 = arith.mulf %153, %167 : vector<2x32xf32>
    %179 = arith.addf %177, %178 : vector<2x32xf32>
    %180 = math.tanh %179 : vector<2x32xf32>
    %181 = arith.mulf %176, %180 : vector<2x32xf32>
    %cst_58 = arith.constant dense<0.000000e+00> : vector<2x128xf32>
    %182 = tpu.matmul %181, %52, %cst_58 {dimension_numbers = #tpu.dot_dimension_numbers<[1], [0], [0], [1], [0, 0, 1, 1], [], []>} : vector<2x32xf32>, vector<32x128xf32>, vector<2x128xf32> -> vector<2x128xf32>
    %c2_59 = arith.constant 2 : index
    %c0_60 = arith.constant 0 : index
    %c0_61 = arith.constant 0 : index
    %183 = vector.load %arg3[%c2_59, %c0_60, %c0_61] : memref<8x2x16xf32, #tpu.memory_space<vmem>>, vector<1x2x16xf32>
    %184 = vector.shape_cast %183 : vector<1x2x16xf32> to vector<2x16xf32>
    %cst_62 = arith.constant dense<0.000000e+00> : vector<2x128xf32>
    %185 = tpu.matmul %184, %53, %cst_62 {dimension_numbers = #tpu.dot_dimension_numbers<[1], [0], [0], [1], [0, 0, 1, 1], [], []>} : vector<2x16xf32>, vector<16x128xf32>, vector<2x128xf32> -> vector<2x128xf32>
    %186 = arith.addf %182, %185 : vector<2x128xf32>
    %187 = vector.broadcast %54 : vector<1x128xf32> to vector<2x128xf32>
    %188 = arith.addf %186, %187 : vector<2x128xf32>
    %189 = vector.extract_strided_slice %48 {offsets = [3, 0, 0], sizes = [1, 2, 32], strides = [1, 1, 1]} : vector<8x2x32xf32> to vector<1x2x32xf32>
    %190 = vector.shape_cast %189 : vector<1x2x32xf32> to vector<2x32xf32>
    %cst_63 = arith.constant dense<0.000000e+00> : vector<2x32xf32>
    %191 = tpu.matmul %181, %41, %cst_63 {dimension_numbers = #tpu.dot_dimension_numbers<[1], [0], [0], [1], [0, 0, 1, 1], [], []>} : vector<2x32xf32>, vector<32x32xf32>, vector<2x32xf32> -> vector<2x32xf32>
    %192 = arith.addf %190, %191 : vector<2x32xf32>
    %193 = arith.negf %192 : vector<2x32xf32>
    %194 = math.exp %193 : vector<2x32xf32>
    %cst_64 = arith.constant 1.000000e+00 : f32
    %195 = vector.broadcast %cst_64 : f32 to vector<2x32xf32>
    %196 = arith.addf %195, %194 : vector<2x32xf32>
    %197 = arith.divf %195, %196 : vector<2x32xf32>
    %198 = vector.extract_strided_slice %49 {offsets = [3, 0, 0], sizes = [1, 2, 32], strides = [1, 1, 1]} : vector<8x2x32xf32> to vector<1x2x32xf32>
    %199 = vector.shape_cast %198 : vector<1x2x32xf32> to vector<2x32xf32>
    %cst_65 = arith.constant dense<0.000000e+00> : vector<2x32xf32>
    %200 = tpu.matmul %181, %43, %cst_65 {dimension_numbers = #tpu.dot_dimension_numbers<[1], [0], [0], [1], [0, 0, 1, 1], [], []>} : vector<2x32xf32>, vector<32x32xf32>, vector<2x32xf32> -> vector<2x32xf32>
    %201 = arith.addf %199, %200 : vector<2x32xf32>
    %202 = arith.negf %201 : vector<2x32xf32>
    %203 = math.exp %202 : vector<2x32xf32>
    %cst_66 = arith.constant 1.000000e+00 : f32
    %204 = vector.broadcast %cst_66 : f32 to vector<2x32xf32>
    %205 = arith.addf %204, %203 : vector<2x32xf32>
    %206 = arith.divf %204, %205 : vector<2x32xf32>
    %207 = vector.extract_strided_slice %50 {offsets = [3, 0, 0], sizes = [1, 2, 32], strides = [1, 1, 1]} : vector<8x2x32xf32> to vector<1x2x32xf32>
    %208 = vector.shape_cast %207 : vector<1x2x32xf32> to vector<2x32xf32>
    %cst_67 = arith.constant dense<0.000000e+00> : vector<2x32xf32>
    %209 = tpu.matmul %181, %45, %cst_67 {dimension_numbers = #tpu.dot_dimension_numbers<[1], [0], [0], [1], [0, 0, 1, 1], [], []>} : vector<2x32xf32>, vector<32x32xf32>, vector<2x32xf32> -> vector<2x32xf32>
    %210 = arith.addf %208, %209 : vector<2x32xf32>
    %211 = math.tanh %210 : vector<2x32xf32>
    %212 = vector.extract_strided_slice %51 {offsets = [3, 0, 0], sizes = [1, 2, 32], strides = [1, 1, 1]} : vector<8x2x32xf32> to vector<1x2x32xf32>
    %213 = vector.shape_cast %212 : vector<1x2x32xf32> to vector<2x32xf32>
    %cst_68 = arith.constant dense<0.000000e+00> : vector<2x32xf32>
    %214 = tpu.matmul %181, %47, %cst_68 {dimension_numbers = #tpu.dot_dimension_numbers<[1], [0], [0], [1], [0, 0, 1, 1], [], []>} : vector<2x32xf32>, vector<32x32xf32>, vector<2x32xf32> -> vector<2x32xf32>
    %215 = arith.addf %213, %214 : vector<2x32xf32>
    %216 = arith.negf %215 : vector<2x32xf32>
    %217 = math.exp %216 : vector<2x32xf32>
    %cst_69 = arith.constant 1.000000e+00 : f32
    %218 = vector.broadcast %cst_69 : f32 to vector<2x32xf32>
    %219 = arith.addf %218, %217 : vector<2x32xf32>
    %220 = arith.divf %218, %219 : vector<2x32xf32>
    %221 = arith.mulf %206, %179 : vector<2x32xf32>
    %222 = arith.mulf %197, %211 : vector<2x32xf32>
    %223 = arith.addf %221, %222 : vector<2x32xf32>
    %224 = math.tanh %223 : vector<2x32xf32>
    %225 = arith.mulf %220, %224 : vector<2x32xf32>
    %cst_70 = arith.constant dense<0.000000e+00> : vector<2x128xf32>
    %226 = tpu.matmul %225, %52, %cst_70 {dimension_numbers = #tpu.dot_dimension_numbers<[1], [0], [0], [1], [0, 0, 1, 1], [], []>} : vector<2x32xf32>, vector<32x128xf32>, vector<2x128xf32> -> vector<2x128xf32>
    %c3_71 = arith.constant 3 : index
    %c0_72 = arith.constant 0 : index
    %c0_73 = arith.constant 0 : index
    %227 = vector.load %arg3[%c3_71, %c0_72, %c0_73] : memref<8x2x16xf32, #tpu.memory_space<vmem>>, vector<1x2x16xf32>
    %228 = vector.shape_cast %227 : vector<1x2x16xf32> to vector<2x16xf32>
    %cst_74 = arith.constant dense<0.000000e+00> : vector<2x128xf32>
    %229 = tpu.matmul %228, %53, %cst_74 {dimension_numbers = #tpu.dot_dimension_numbers<[1], [0], [0], [1], [0, 0, 1, 1], [], []>} : vector<2x16xf32>, vector<16x128xf32>, vector<2x128xf32> -> vector<2x128xf32>
    %230 = arith.addf %226, %229 : vector<2x128xf32>
    %231 = vector.broadcast %54 : vector<1x128xf32> to vector<2x128xf32>
    %232 = arith.addf %230, %231 : vector<2x128xf32>
    %233 = vector.extract_strided_slice %48 {offsets = [4, 0, 0], sizes = [1, 2, 32], strides = [1, 1, 1]} : vector<8x2x32xf32> to vector<1x2x32xf32>
    %234 = vector.shape_cast %233 : vector<1x2x32xf32> to vector<2x32xf32>
    %cst_75 = arith.constant dense<0.000000e+00> : vector<2x32xf32>
    %235 = tpu.matmul %225, %41, %cst_75 {dimension_numbers = #tpu.dot_dimension_numbers<[1], [0], [0], [1], [0, 0, 1, 1], [], []>} : vector<2x32xf32>, vector<32x32xf32>, vector<2x32xf32> -> vector<2x32xf32>
    %236 = arith.addf %234, %235 : vector<2x32xf32>
    %237 = arith.negf %236 : vector<2x32xf32>
    %238 = math.exp %237 : vector<2x32xf32>
    %cst_76 = arith.constant 1.000000e+00 : f32
    %239 = vector.broadcast %cst_76 : f32 to vector<2x32xf32>
    %240 = arith.addf %239, %238 : vector<2x32xf32>
    %241 = arith.divf %239, %240 : vector<2x32xf32>
    %242 = vector.extract_strided_slice %49 {offsets = [4, 0, 0], sizes = [1, 2, 32], strides = [1, 1, 1]} : vector<8x2x32xf32> to vector<1x2x32xf32>
    %243 = vector.shape_cast %242 : vector<1x2x32xf32> to vector<2x32xf32>
    %cst_77 = arith.constant dense<0.000000e+00> : vector<2x32xf32>
    %244 = tpu.matmul %225, %43, %cst_77 {dimension_numbers = #tpu.dot_dimension_numbers<[1], [0], [0], [1], [0, 0, 1, 1], [], []>} : vector<2x32xf32>, vector<32x32xf32>, vector<2x32xf32> -> vector<2x32xf32>
    %245 = arith.addf %243, %244 : vector<2x32xf32>
    %246 = arith.negf %245 : vector<2x32xf32>
    %247 = math.exp %246 : vector<2x32xf32>
    %cst_78 = arith.constant 1.000000e+00 : f32
    %248 = vector.broadcast %cst_78 : f32 to vector<2x32xf32>
    %249 = arith.addf %248, %247 : vector<2x32xf32>
    %250 = arith.divf %248, %249 : vector<2x32xf32>
    %251 = vector.extract_strided_slice %50 {offsets = [4, 0, 0], sizes = [1, 2, 32], strides = [1, 1, 1]} : vector<8x2x32xf32> to vector<1x2x32xf32>
    %252 = vector.shape_cast %251 : vector<1x2x32xf32> to vector<2x32xf32>
    %cst_79 = arith.constant dense<0.000000e+00> : vector<2x32xf32>
    %253 = tpu.matmul %225, %45, %cst_79 {dimension_numbers = #tpu.dot_dimension_numbers<[1], [0], [0], [1], [0, 0, 1, 1], [], []>} : vector<2x32xf32>, vector<32x32xf32>, vector<2x32xf32> -> vector<2x32xf32>
    %254 = arith.addf %252, %253 : vector<2x32xf32>
    %255 = math.tanh %254 : vector<2x32xf32>
    %256 = vector.extract_strided_slice %51 {offsets = [4, 0, 0], sizes = [1, 2, 32], strides = [1, 1, 1]} : vector<8x2x32xf32> to vector<1x2x32xf32>
    %257 = vector.shape_cast %256 : vector<1x2x32xf32> to vector<2x32xf32>
    %cst_80 = arith.constant dense<0.000000e+00> : vector<2x32xf32>
    %258 = tpu.matmul %225, %47, %cst_80 {dimension_numbers = #tpu.dot_dimension_numbers<[1], [0], [0], [1], [0, 0, 1, 1], [], []>} : vector<2x32xf32>, vector<32x32xf32>, vector<2x32xf32> -> vector<2x32xf32>
    %259 = arith.addf %257, %258 : vector<2x32xf32>
    %260 = arith.negf %259 : vector<2x32xf32>
    %261 = math.exp %260 : vector<2x32xf32>
    %cst_81 = arith.constant 1.000000e+00 : f32
    %262 = vector.broadcast %cst_81 : f32 to vector<2x32xf32>
    %263 = arith.addf %262, %261 : vector<2x32xf32>
    %264 = arith.divf %262, %263 : vector<2x32xf32>
    %265 = arith.mulf %250, %223 : vector<2x32xf32>
    %266 = arith.mulf %241, %255 : vector<2x32xf32>
    %267 = arith.addf %265, %266 : vector<2x32xf32>
    %268 = math.tanh %267 : vector<2x32xf32>
    %269 = arith.mulf %264, %268 : vector<2x32xf32>
    %cst_82 = arith.constant dense<0.000000e+00> : vector<2x128xf32>
    %270 = tpu.matmul %269, %52, %cst_82 {dimension_numbers = #tpu.dot_dimension_numbers<[1], [0], [0], [1], [0, 0, 1, 1], [], []>} : vector<2x32xf32>, vector<32x128xf32>, vector<2x128xf32> -> vector<2x128xf32>
    %c4 = arith.constant 4 : index
    %c0_83 = arith.constant 0 : index
    %c0_84 = arith.constant 0 : index
    %271 = vector.load %arg3[%c4, %c0_83, %c0_84] : memref<8x2x16xf32, #tpu.memory_space<vmem>>, vector<1x2x16xf32>
    %272 = vector.shape_cast %271 : vector<1x2x16xf32> to vector<2x16xf32>
    %cst_85 = arith.constant dense<0.000000e+00> : vector<2x128xf32>
    %273 = tpu.matmul %272, %53, %cst_85 {dimension_numbers = #tpu.dot_dimension_numbers<[1], [0], [0], [1], [0, 0, 1, 1], [], []>} : vector<2x16xf32>, vector<16x128xf32>, vector<2x128xf32> -> vector<2x128xf32>
    %274 = arith.addf %270, %273 : vector<2x128xf32>
    %275 = vector.broadcast %54 : vector<1x128xf32> to vector<2x128xf32>
    %276 = arith.addf %274, %275 : vector<2x128xf32>
    %277 = vector.extract_strided_slice %48 {offsets = [5, 0, 0], sizes = [1, 2, 32], strides = [1, 1, 1]} : vector<8x2x32xf32> to vector<1x2x32xf32>
    %278 = vector.shape_cast %277 : vector<1x2x32xf32> to vector<2x32xf32>
    %cst_86 = arith.constant dense<0.000000e+00> : vector<2x32xf32>
    %279 = tpu.matmul %269, %41, %cst_86 {dimension_numbers = #tpu.dot_dimension_numbers<[1], [0], [0], [1], [0, 0, 1, 1], [], []>} : vector<2x32xf32>, vector<32x32xf32>, vector<2x32xf32> -> vector<2x32xf32>
    %280 = arith.addf %278, %279 : vector<2x32xf32>
    %281 = arith.negf %280 : vector<2x32xf32>
    %282 = math.exp %281 : vector<2x32xf32>
    %cst_87 = arith.constant 1.000000e+00 : f32
    %283 = vector.broadcast %cst_87 : f32 to vector<2x32xf32>
    %284 = arith.addf %283, %282 : vector<2x32xf32>
    %285 = arith.divf %283, %284 : vector<2x32xf32>
    %286 = vector.extract_strided_slice %49 {offsets = [5, 0, 0], sizes = [1, 2, 32], strides = [1, 1, 1]} : vector<8x2x32xf32> to vector<1x2x32xf32>
    %287 = vector.shape_cast %286 : vector<1x2x32xf32> to vector<2x32xf32>
    %cst_88 = arith.constant dense<0.000000e+00> : vector<2x32xf32>
    %288 = tpu.matmul %269, %43, %cst_88 {dimension_numbers = #tpu.dot_dimension_numbers<[1], [0], [0], [1], [0, 0, 1, 1], [], []>} : vector<2x32xf32>, vector<32x32xf32>, vector<2x32xf32> -> vector<2x32xf32>
    %289 = arith.addf %287, %288 : vector<2x32xf32>
    %290 = arith.negf %289 : vector<2x32xf32>
    %291 = math.exp %290 : vector<2x32xf32>
    %cst_89 = arith.constant 1.000000e+00 : f32
    %292 = vector.broadcast %cst_89 : f32 to vector<2x32xf32>
    %293 = arith.addf %292, %291 : vector<2x32xf32>
    %294 = arith.divf %292, %293 : vector<2x32xf32>
    %295 = vector.extract_strided_slice %50 {offsets = [5, 0, 0], sizes = [1, 2, 32], strides = [1, 1, 1]} : vector<8x2x32xf32> to vector<1x2x32xf32>
    %296 = vector.shape_cast %295 : vector<1x2x32xf32> to vector<2x32xf32>
    %cst_90 = arith.constant dense<0.000000e+00> : vector<2x32xf32>
    %297 = tpu.matmul %269, %45, %cst_90 {dimension_numbers = #tpu.dot_dimension_numbers<[1], [0], [0], [1], [0, 0, 1, 1], [], []>} : vector<2x32xf32>, vector<32x32xf32>, vector<2x32xf32> -> vector<2x32xf32>
    %298 = arith.addf %296, %297 : vector<2x32xf32>
    %299 = math.tanh %298 : vector<2x32xf32>
    %300 = vector.extract_strided_slice %51 {offsets = [5, 0, 0], sizes = [1, 2, 32], strides = [1, 1, 1]} : vector<8x2x32xf32> to vector<1x2x32xf32>
    %301 = vector.shape_cast %300 : vector<1x2x32xf32> to vector<2x32xf32>
    %cst_91 = arith.constant dense<0.000000e+00> : vector<2x32xf32>
    %302 = tpu.matmul %269, %47, %cst_91 {dimension_numbers = #tpu.dot_dimension_numbers<[1], [0], [0], [1], [0, 0, 1, 1], [], []>} : vector<2x32xf32>, vector<32x32xf32>, vector<2x32xf32> -> vector<2x32xf32>
    %303 = arith.addf %301, %302 : vector<2x32xf32>
    %304 = arith.negf %303 : vector<2x32xf32>
    %305 = math.exp %304 : vector<2x32xf32>
    %cst_92 = arith.constant 1.000000e+00 : f32
    %306 = vector.broadcast %cst_92 : f32 to vector<2x32xf32>
    %307 = arith.addf %306, %305 : vector<2x32xf32>
    %308 = arith.divf %306, %307 : vector<2x32xf32>
    %309 = arith.mulf %294, %267 : vector<2x32xf32>
    %310 = arith.mulf %285, %299 : vector<2x32xf32>
    %311 = arith.addf %309, %310 : vector<2x32xf32>
    %312 = math.tanh %311 : vector<2x32xf32>
    %313 = arith.mulf %308, %312 : vector<2x32xf32>
    %cst_93 = arith.constant dense<0.000000e+00> : vector<2x128xf32>
    %314 = tpu.matmul %313, %52, %cst_93 {dimension_numbers = #tpu.dot_dimension_numbers<[1], [0], [0], [1], [0, 0, 1, 1], [], []>} : vector<2x32xf32>, vector<32x128xf32>, vector<2x128xf32> -> vector<2x128xf32>
    %c5 = arith.constant 5 : index
    %c0_94 = arith.constant 0 : index
    %c0_95 = arith.constant 0 : index
    %315 = vector.load %arg3[%c5, %c0_94, %c0_95] : memref<8x2x16xf32, #tpu.memory_space<vmem>>, vector<1x2x16xf32>
    %316 = vector.shape_cast %315 : vector<1x2x16xf32> to vector<2x16xf32>
    %cst_96 = arith.constant dense<0.000000e+00> : vector<2x128xf32>
    %317 = tpu.matmul %316, %53, %cst_96 {dimension_numbers = #tpu.dot_dimension_numbers<[1], [0], [0], [1], [0, 0, 1, 1], [], []>} : vector<2x16xf32>, vector<16x128xf32>, vector<2x128xf32> -> vector<2x128xf32>
    %318 = arith.addf %314, %317 : vector<2x128xf32>
    %319 = vector.broadcast %54 : vector<1x128xf32> to vector<2x128xf32>
    %320 = arith.addf %318, %319 : vector<2x128xf32>
    %321 = vector.extract_strided_slice %48 {offsets = [6, 0, 0], sizes = [1, 2, 32], strides = [1, 1, 1]} : vector<8x2x32xf32> to vector<1x2x32xf32>
    %322 = vector.shape_cast %321 : vector<1x2x32xf32> to vector<2x32xf32>
    %cst_97 = arith.constant dense<0.000000e+00> : vector<2x32xf32>
    %323 = tpu.matmul %313, %41, %cst_97 {dimension_numbers = #tpu.dot_dimension_numbers<[1], [0], [0], [1], [0, 0, 1, 1], [], []>} : vector<2x32xf32>, vector<32x32xf32>, vector<2x32xf32> -> vector<2x32xf32>
    %324 = arith.addf %322, %323 : vector<2x32xf32>
    %325 = arith.negf %324 : vector<2x32xf32>
    %326 = math.exp %325 : vector<2x32xf32>
    %cst_98 = arith.constant 1.000000e+00 : f32
    %327 = vector.broadcast %cst_98 : f32 to vector<2x32xf32>
    %328 = arith.addf %327, %326 : vector<2x32xf32>
    %329 = arith.divf %327, %328 : vector<2x32xf32>
    %330 = vector.extract_strided_slice %49 {offsets = [6, 0, 0], sizes = [1, 2, 32], strides = [1, 1, 1]} : vector<8x2x32xf32> to vector<1x2x32xf32>
    %331 = vector.shape_cast %330 : vector<1x2x32xf32> to vector<2x32xf32>
    %cst_99 = arith.constant dense<0.000000e+00> : vector<2x32xf32>
    %332 = tpu.matmul %313, %43, %cst_99 {dimension_numbers = #tpu.dot_dimension_numbers<[1], [0], [0], [1], [0, 0, 1, 1], [], []>} : vector<2x32xf32>, vector<32x32xf32>, vector<2x32xf32> -> vector<2x32xf32>
    %333 = arith.addf %331, %332 : vector<2x32xf32>
    %334 = arith.negf %333 : vector<2x32xf32>
    %335 = math.exp %334 : vector<2x32xf32>
    %cst_100 = arith.constant 1.000000e+00 : f32
    %336 = vector.broadcast %cst_100 : f32 to vector<2x32xf32>
    %337 = arith.addf %336, %335 : vector<2x32xf32>
    %338 = arith.divf %336, %337 : vector<2x32xf32>
    %339 = vector.extract_strided_slice %50 {offsets = [6, 0, 0], sizes = [1, 2, 32], strides = [1, 1, 1]} : vector<8x2x32xf32> to vector<1x2x32xf32>
    %340 = vector.shape_cast %339 : vector<1x2x32xf32> to vector<2x32xf32>
    %cst_101 = arith.constant dense<0.000000e+00> : vector<2x32xf32>
    %341 = tpu.matmul %313, %45, %cst_101 {dimension_numbers = #tpu.dot_dimension_numbers<[1], [0], [0], [1], [0, 0, 1, 1], [], []>} : vector<2x32xf32>, vector<32x32xf32>, vector<2x32xf32> -> vector<2x32xf32>
    %342 = arith.addf %340, %341 : vector<2x32xf32>
    %343 = math.tanh %342 : vector<2x32xf32>
    %344 = vector.extract_strided_slice %51 {offsets = [6, 0, 0], sizes = [1, 2, 32], strides = [1, 1, 1]} : vector<8x2x32xf32> to vector<1x2x32xf32>
    %345 = vector.shape_cast %344 : vector<1x2x32xf32> to vector<2x32xf32>
    %cst_102 = arith.constant dense<0.000000e+00> : vector<2x32xf32>
    %346 = tpu.matmul %313, %47, %cst_102 {dimension_numbers = #tpu.dot_dimension_numbers<[1], [0], [0], [1], [0, 0, 1, 1], [], []>} : vector<2x32xf32>, vector<32x32xf32>, vector<2x32xf32> -> vector<2x32xf32>
    %347 = arith.addf %345, %346 : vector<2x32xf32>
    %348 = arith.negf %347 : vector<2x32xf32>
    %349 = math.exp %348 : vector<2x32xf32>
    %cst_103 = arith.constant 1.000000e+00 : f32
    %350 = vector.broadcast %cst_103 : f32 to vector<2x32xf32>
    %351 = arith.addf %350, %349 : vector<2x32xf32>
    %352 = arith.divf %350, %351 : vector<2x32xf32>
    %353 = arith.mulf %338, %311 : vector<2x32xf32>
    %354 = arith.mulf %329, %343 : vector<2x32xf32>
    %355 = arith.addf %353, %354 : vector<2x32xf32>
    %356 = math.tanh %355 : vector<2x32xf32>
    %357 = arith.mulf %352, %356 : vector<2x32xf32>
    %cst_104 = arith.constant dense<0.000000e+00> : vector<2x128xf32>
    %358 = tpu.matmul %357, %52, %cst_104 {dimension_numbers = #tpu.dot_dimension_numbers<[1], [0], [0], [1], [0, 0, 1, 1], [], []>} : vector<2x32xf32>, vector<32x128xf32>, vector<2x128xf32> -> vector<2x128xf32>
    %c6 = arith.constant 6 : index
    %c0_105 = arith.constant 0 : index
    %c0_106 = arith.constant 0 : index
    %359 = vector.load %arg3[%c6, %c0_105, %c0_106] : memref<8x2x16xf32, #tpu.memory_space<vmem>>, vector<1x2x16xf32>
    %360 = vector.shape_cast %359 : vector<1x2x16xf32> to vector<2x16xf32>
    %cst_107 = arith.constant dense<0.000000e+00> : vector<2x128xf32>
    %361 = tpu.matmul %360, %53, %cst_107 {dimension_numbers = #tpu.dot_dimension_numbers<[1], [0], [0], [1], [0, 0, 1, 1], [], []>} : vector<2x16xf32>, vector<16x128xf32>, vector<2x128xf32> -> vector<2x128xf32>
    %362 = arith.addf %358, %361 : vector<2x128xf32>
    %363 = vector.broadcast %54 : vector<1x128xf32> to vector<2x128xf32>
    %364 = arith.addf %362, %363 : vector<2x128xf32>
    %365 = vector.extract_strided_slice %48 {offsets = [7, 0, 0], sizes = [1, 2, 32], strides = [1, 1, 1]} : vector<8x2x32xf32> to vector<1x2x32xf32>
    %366 = vector.shape_cast %365 : vector<1x2x32xf32> to vector<2x32xf32>
    %cst_108 = arith.constant dense<0.000000e+00> : vector<2x32xf32>
    %367 = tpu.matmul %357, %41, %cst_108 {dimension_numbers = #tpu.dot_dimension_numbers<[1], [0], [0], [1], [0, 0, 1, 1], [], []>} : vector<2x32xf32>, vector<32x32xf32>, vector<2x32xf32> -> vector<2x32xf32>
    %368 = arith.addf %366, %367 : vector<2x32xf32>
    %369 = arith.negf %368 : vector<2x32xf32>
    %370 = math.exp %369 : vector<2x32xf32>
    %cst_109 = arith.constant 1.000000e+00 : f32
    %371 = vector.broadcast %cst_109 : f32 to vector<2x32xf32>
    %372 = arith.addf %371, %370 : vector<2x32xf32>
    %373 = arith.divf %371, %372 : vector<2x32xf32>
    %374 = vector.extract_strided_slice %49 {offsets = [7, 0, 0], sizes = [1, 2, 32], strides = [1, 1, 1]} : vector<8x2x32xf32> to vector<1x2x32xf32>
    %375 = vector.shape_cast %374 : vector<1x2x32xf32> to vector<2x32xf32>
    %cst_110 = arith.constant dense<0.000000e+00> : vector<2x32xf32>
    %376 = tpu.matmul %357, %43, %cst_110 {dimension_numbers = #tpu.dot_dimension_numbers<[1], [0], [0], [1], [0, 0, 1, 1], [], []>} : vector<2x32xf32>, vector<32x32xf32>, vector<2x32xf32> -> vector<2x32xf32>
    %377 = arith.addf %375, %376 : vector<2x32xf32>
    %378 = arith.negf %377 : vector<2x32xf32>
    %379 = math.exp %378 : vector<2x32xf32>
    %cst_111 = arith.constant 1.000000e+00 : f32
    %380 = vector.broadcast %cst_111 : f32 to vector<2x32xf32>
    %381 = arith.addf %380, %379 : vector<2x32xf32>
    %382 = arith.divf %380, %381 : vector<2x32xf32>
    %383 = vector.extract_strided_slice %50 {offsets = [7, 0, 0], sizes = [1, 2, 32], strides = [1, 1, 1]} : vector<8x2x32xf32> to vector<1x2x32xf32>
    %384 = vector.shape_cast %383 : vector<1x2x32xf32> to vector<2x32xf32>
    %cst_112 = arith.constant dense<0.000000e+00> : vector<2x32xf32>
    %385 = tpu.matmul %357, %45, %cst_112 {dimension_numbers = #tpu.dot_dimension_numbers<[1], [0], [0], [1], [0, 0, 1, 1], [], []>} : vector<2x32xf32>, vector<32x32xf32>, vector<2x32xf32> -> vector<2x32xf32>
    %386 = arith.addf %384, %385 : vector<2x32xf32>
    %387 = math.tanh %386 : vector<2x32xf32>
    %388 = vector.extract_strided_slice %51 {offsets = [7, 0, 0], sizes = [1, 2, 32], strides = [1, 1, 1]} : vector<8x2x32xf32> to vector<1x2x32xf32>
    %389 = vector.shape_cast %388 : vector<1x2x32xf32> to vector<2x32xf32>
    %cst_113 = arith.constant dense<0.000000e+00> : vector<2x32xf32>
    %390 = tpu.matmul %357, %47, %cst_113 {dimension_numbers = #tpu.dot_dimension_numbers<[1], [0], [0], [1], [0, 0, 1, 1], [], []>} : vector<2x32xf32>, vector<32x32xf32>, vector<2x32xf32> -> vector<2x32xf32>
    %391 = arith.addf %389, %390 : vector<2x32xf32>
    %392 = arith.negf %391 : vector<2x32xf32>
    %393 = math.exp %392 : vector<2x32xf32>
    %cst_114 = arith.constant 1.000000e+00 : f32
    %394 = vector.broadcast %cst_114 : f32 to vector<2x32xf32>
    %395 = arith.addf %394, %393 : vector<2x32xf32>
    %396 = arith.divf %394, %395 : vector<2x32xf32>
    %397 = arith.mulf %382, %355 : vector<2x32xf32>
    %398 = arith.mulf %373, %387 : vector<2x32xf32>
    %399 = arith.addf %397, %398 : vector<2x32xf32>
    %400 = math.tanh %399 : vector<2x32xf32>
    %401 = arith.mulf %396, %400 : vector<2x32xf32>
    %cst_115 = arith.constant dense<0.000000e+00> : vector<2x128xf32>
    %402 = tpu.matmul %401, %52, %cst_115 {dimension_numbers = #tpu.dot_dimension_numbers<[1], [0], [0], [1], [0, 0, 1, 1], [], []>} : vector<2x32xf32>, vector<32x128xf32>, vector<2x128xf32> -> vector<2x128xf32>
    %c7 = arith.constant 7 : index
    %c0_116 = arith.constant 0 : index
    %c0_117 = arith.constant 0 : index
    %403 = vector.load %arg3[%c7, %c0_116, %c0_117] : memref<8x2x16xf32, #tpu.memory_space<vmem>>, vector<1x2x16xf32>
    %404 = vector.shape_cast %403 : vector<1x2x16xf32> to vector<2x16xf32>
    %cst_118 = arith.constant dense<0.000000e+00> : vector<2x128xf32>
    %405 = tpu.matmul %404, %53, %cst_118 {dimension_numbers = #tpu.dot_dimension_numbers<[1], [0], [0], [1], [0, 0, 1, 1], [], []>} : vector<2x16xf32>, vector<16x128xf32>, vector<2x128xf32> -> vector<2x128xf32>
    %406 = arith.addf %402, %405 : vector<2x128xf32>
    %407 = vector.broadcast %54 : vector<1x128xf32> to vector<2x128xf32>
    %408 = arith.addf %406, %407 : vector<2x128xf32>
    %409 = vector.shape_cast %100 : vector<2x128xf32> to vector<1x2x128xf32>
    %410 = vector.shape_cast %144 : vector<2x128xf32> to vector<1x2x128xf32>
    %411 = vector.shape_cast %188 : vector<2x128xf32> to vector<1x2x128xf32>
    %412 = vector.shape_cast %232 : vector<2x128xf32> to vector<1x2x128xf32>
    %413 = vector.shape_cast %276 : vector<2x128xf32> to vector<1x2x128xf32>
    %414 = vector.shape_cast %320 : vector<2x128xf32> to vector<1x2x128xf32>
    %415 = vector.shape_cast %364 : vector<2x128xf32> to vector<1x2x128xf32>
    %416 = vector.shape_cast %408 : vector<2x128xf32> to vector<1x2x128xf32>
    %417 = tpu.concatenate %409, %410, %411, %412, %413, %414, %415, %416 in 0 : vector<1x2x128xf32>, vector<1x2x128xf32>, vector<1x2x128xf32>, vector<1x2x128xf32>, vector<1x2x128xf32>, vector<1x2x128xf32>, vector<1x2x128xf32>, vector<1x2x128xf32> -> vector<8x2x128xf32>
    %c0_119 = arith.constant 0 : index
    %c0_120 = arith.constant 0 : index
    %c0_121 = arith.constant 0 : index
    %418 = vector.load %arg11[%c0_119, %c0_120, %c0_121] : memref<8x2x128xf32, #tpu.memory_space<vmem>>, vector<8x2x128xf32>
    tpu.vector_store %arg11[%c0_119, %c0_120, %c0_121], %417 {strides = array<i32>} : memref<8x2x128xf32, #tpu.memory_space<vmem>>, vector<8x2x128xf32>,
    return
  }
  func.func @transform_0(%arg0: i32) -> (i32, i32, i32) {
    %c0_i32 = arith.constant 0 : i32
    %c0_i32_0 = arith.constant 0 : i32
    %c0_i32_1 = arith.constant 0 : i32
    return %c0_i32, %arg0, %c0_i32_0 : i32, i32, i32
  }
  func.func @transform_1(%arg0: i32) -> (i32, i32, i32) {
    %c0_i32 = arith.constant 0 : i32
    %c0_i32_0 = arith.constant 0 : i32
    %c0_i32_1 = arith.constant 0 : i32
    return %c0_i32, %arg0, %c0_i32_0 : i32, i32, i32
  }
  func.func @transform_2(%arg0: i32) -> (i32, i32, i32) {
    %c0_i32 = arith.constant 0 : i32
    %c0_i32_0 = arith.constant 0 : i32
    %c0_i32_1 = arith.constant 0 : i32
    return %c0_i32, %arg0, %c0_i32_0 : i32, i32, i32
  }
  func.func @transform_3(%arg0: i32) -> (i32, i32) {
    %c0_i32 = arith.constant 0 : i32
    %c0_i32_0 = arith.constant 0 : i32
    %c0_i32_1 = arith.constant 0 : i32
    return %c0_i32, %c0_i32_0 : i32, i32
  }
  func.func @transform_4(%arg0: i32) -> (i32, i32) {
    %c0_i32 = arith.constant 0 : i32
    %c0_i32_0 = arith.constant 0 : i32
    %c0_i32_1 = arith.constant 0 : i32
    return %c0_i32, %c0_i32_0 : i32, i32
  }
  func.func @transform_5(%arg0: i32) -> (i32, i32) {
    %c0_i32 = arith.constant 0 : i32
    %c0_i32_0 = arith.constant 0 : i32
    %c0_i32_1 = arith.constant 0 : i32
    return %c0_i32, %c0_i32_0 : i32, i32
  }
  func.func @transform_6(%arg0: i32) -> (i32, i32, i32) {
    %c0_i32 = arith.constant 0 : i32
    %c0_i32_0 = arith.constant 0 : i32
    %c0_i32_1 = arith.constant 0 : i32
    %c0_i32_2 = arith.constant 0 : i32
    return %c0_i32, %c0_i32_0, %c0_i32_1 : i32, i32, i32
  }
  func.func @transform_7(%arg0: i32) -> (i32, i32) {
    %c0_i32 = arith.constant 0 : i32
    %c0_i32_0 = arith.constant 0 : i32
    %c0_i32_1 = arith.constant 0 : i32
    return %c0_i32, %c0_i32_0 : i32, i32
  }
  func.func @transform_8(%arg0: i32) -> (i32, i32) {
    %c0_i32 = arith.constant 0 : i32
    %c0_i32_0 = arith.constant 0 : i32
    %c0_i32_1 = arith.constant 0 : i32
    return %c0_i32, %c0_i32_0 : i32, i32
  }
  func.func @transform_9(%arg0: i32) -> (i32, i32) {
    %c0_i32 = arith.constant 0 : i32
    %c0_i32_0 = arith.constant 0 : i32
    %c0_i32_1 = arith.constant 0 : i32
    return %c0_i32, %c0_i32_0 : i32, i32
  }
  func.func @transform_10(%arg0: i32) -> (i32, i32, i32) {
    %c0_i32 = arith.constant 0 : i32
    %c0_i32_0 = arith.constant 0 : i32
    %c0_i32_1 = arith.constant 0 : i32
    return %c0_i32, %arg0, %c0_i32_0 : i32, i32, i32
  }
}

</mosaic_0001>

<bundles_post_ra>
// kernel: mqrnn_forward.1
= control target key start
LH: loop header
LB: loop body
LE: loop exit
PB: predicated region body
PF: predicated region fallthrough
CT: control target
= control target key end

     0   :  { %15 = vsyncpa [#allocation3], 0  ;;  %s2465_s16 = smov [#allocation2]   ;;  %s2466_s18 = smov 128   ;;  %s3218_s0 = inlined_call_operand.vmem [shape: f32[8,2,1], index: 0, kind: input, shape index: {}]   ;;  %s3219_s1 = inlined_call_operand.vmem [shape: f32[8,2,4], index: 1, kind: input, shape index: {}]   ;;  %s3220_s2 = inlined_call_operand.vmem [shape: f32[8,2,16], index: 2, kind: input, shape index: {}]   ;;  %s3221_s3 = inlined_call_operand.vmem [shape: f32[1,128], index: 3, kind: input, shape index: {}]   ;;  %s3222_s4 = inlined_call_operand.vmem [shape: f32[4,128], index: 4, kind: input, shape index: {}]   ;;  %s3223_s5 = inlined_call_operand.vmem [shape: f32[1,128], index: 5, kind: input, shape index: {}]   ;;  %s3224_s6 = inlined_call_operand.hbm [shape: f32[4,32,32], index: 6, kind: input, shape index: {}]   ;;  %s3225_s7 = inlined_call_operand.vmem [shape: f32[32,128], index: 7, kind: input, shape index: {}]   ;;  %s3226_s8 = inlined_call_operand.vmem [shape: f32[16,128], index: 8, kind: input, shape index: {}]   ;;  %s3227_s9 = inlined_call_operand.vmem [shape: f32[1,128], index: 9, kind: input, shape index: {}]   ;;  %s3228_s10 = inlined_call_operand.vmem [shape: f32[8,2,128], index: 10, kind: output, shape index: {}]  }
   0x1   :  { %s32_s15 = sshll.u32 %s3224_s6, 4  ;;  %s34_s17 = sshll.u32 %s2465_s16, 4  ;;  %s33_s15 = int_to_ptr.hbm [resolvable:$true] %s32_s15  ;;  %s35_s17 = int_to_ptr.vmem [resolvable:$true] %s34_s17 }
   0x2   :  { %s2467_s19 = smov 8  }
   0x3   :  { %40 = dma.hbm_to_vmem [thread:$0]  %s33_s15, 2048, %s35_s17, [#allocation3], %s2466_s18, %s2466_s18, %s2467_s19  }
   0x4   :  { %2463 = dma.done.wait [#allocation3], 2048  }
   0x5   :  { %2464 = vsyncadd [#allocation3], 4294965248  ;;  %v2468_v0 = vmov 0   ;;  %v2469_v1 = vmov 2   ;;  %v2537_v2 = vld [vmem:[#allocation2 + $0x58] sm:$0xff]  ;;  %v2539_v3 = vld [vmem:[#allocation2 + $0x50] sm:$0xff] }
   0x6   :  { %2244 = vset.pattern.permute.xlu0 %v2468_v0  ;;  %2246 = vset.pattern.permute.xlu1 %v2469_v1  ;;  %v2542_v4 = vld [vmem:[#allocation2 + $0x38] sm:$0xff]  ;;  %v2544_v5 = vld [vmem:[#allocation2 + $0x30] sm:$0xff]  ;;  %v2546_v6 = vld [vmem:[#allocation2 + $0x48] sm:$0xff]  ;;  %v2470_v17 = vmov 0.0   ;;  %v2471_v20 = vmov 1   ;;  %v2472_v22 = vmov 3  }
   0x7   :  { %2248 = vset.pattern.permute.xlu2 %v2468_v0  ;;  %462 = vmatpush.msra.mxu2 %v2537_v2  ;;  %v111_v7 = vld [vmem:[%s3219_s1] sm:$0x3]  ;;  %v2553_v8 = vld [vmem:[#allocation2 + $0x28] sm:$0xff]  ;;  %v2555_v9 = vld [vmem:[#allocation2 + $0x18] sm:$0xff]  ;;  %s2473_s23 = smov 64   ;;  %s2474_s24 = smov 32  }
   0x8   :  { %418 = vmatpush.msra.mxu1 %v2542_v4  ;;  %122 = vperm.xlu0 %2244, %v111_v7   ;;  %v2557_v10 = vld [vmem:[#allocation2 + $0x10] sm:$0xff]  ;;  %v2559_v11 = vld [vmem:[#allocation2 + $0x40] sm:$0xff]  ;;  %v2563_v12 = vld [vmem:[#allocation2 + $0x78] sm:$0xff]  ;;  %s2475_s30 = smov 96   ;;  %vm538_vm8 = vcmask 130048   ;;  %vm362_vm13 = vcmask 261120  }
   0x9   :  { %463 = vmatpush.msra.mxu2 %v2539_v3  ;;  %378 = vmatpush.msra.mxu0 %v2555_v9  ;;  %v2566_v13 = vld [vmem:[#allocation2 + $0x20] sm:$0xff]  ;;  %v2568_v14 = vld [vmem:[#allocation2 + $0x8] sm:$0xff]  ;;  %v2574_v15 = vld [vmem:[#allocation2 + $0x70] sm:$0xff] }
   0xa   :  { %419 = vmatpush.msra.mxu1 %v2544_v5  ;;  %219 = vperm.xlu1 %2246, %v111_v7   ;;  %v51_v16 = vld [vmem:[%s3218_s0] sm:$0x3]  ;;  %v2584_v19 = vld [vmem:[#allocation2 + $0x68] sm:$0xff] }
   0xb   :  { %464 = vmatpush.msra.mxu2 %v2546_v6  ;;  %379 = vmatpush.msra.mxu0 %v2557_v10  ;;  %v2580_v18 = vld [vmem:[#allocation2] sm:$0xff] }
   0xc   :  { %420 = vmatpush.msra.mxu1 %v2553_v8  ;;  %488 = vmatpush.msra.mxu3 %v2563_v12  ;;  %v2588_v21 = vld [vmem:[#allocation2 + $0x60] sm:$0xff] }
   0xd   :  { %465 = vmatpush.msra.mxu2 %v2559_v11  ;;  %380 = vmatpush.msra.mxu0 %v2568_v14  ;;  %v119_v26 = vld [vmem:[%s3222_s4] sm:$0xf] }
   0xe   :  { %466 = vmatmul.f32.vlgmr.msra.gmra.mxu2 %v2470_v17  ;;  %421 = vmatpush.msra.mxu1 %v2566_v13  ;;  %v2609_v28 = vperm.slane %v119_v26, 0  ;;  %v2611_v29 = vperm.slane %v119_v26, 1  ;;  %v2614_v32 = vperm.slane %v119_v26, 2  ;;  %v2618_v36 = vperm.slane %v119_v26, 3  ;;  %v2624_v40 = vld [vmem:[%s3221_s3] ss:$0 sm:$0xff] }
   0xf   :  { %422 = vmatmul.f32.vlgmr.msra.gmra.mxu1 %v2470_v17  ;;  %489 = vmatpush.msra.mxu3 %v2574_v15  ;;  %v2630_v44 = vld [vmem:[%s3223_s5] ss:$0 sm:$0xff] }
  0x10   :  { %62 = vperm.xlu2 %2248, %v51_v16   ;;  %2245 = vset.pattern.permute.xlu0 %v2471_v20 }
  0x11   :  { %381 = vmatpush.msra.mxu0 %v2580_v18  ;;  %170 = vperm.xlu0 %2245, %v111_v7  }
  0x12   :  { %382 = vmatmul.f32.vlgmr.msra.gmra.mxu0 %v2470_v17  ;;  %2247 = vset.pattern.permute.xlu1 %v2472_v22 }
  0x13   :  { %490 = vmatpush.msra.mxu3 %v2584_v19  ;;  %268 = vperm.xlu1 %2247, %v111_v7  }
  0x14   :  { %603 = vmatpush.msrb.mxu2 %v2555_v9 }
  0x15   :  { %491 = vmatpush.msra.mxu3 %v2588_v21 }
  0x16   :  { %492 = vmatmul.f32.vlgmr.msra.gmra.mxu3 %v2470_v17  ;;  %604 = vmatpush.msrb.mxu2 %v2557_v10 }
  0x17   :  { %643 = vmatpush.msrb.mxu3 %v2542_v4 }
  0x18   :  { %605 = vmatpush.msrb.mxu2 %v2568_v14  ;;  %2250 = vset.pattern.permute.xlu2 %v2471_v20 }
  0x19   :  { %644 = vmatpush.msrb.mxu3 %v2544_v5  ;;  %2251 = vset.pattern.permute.xlu0 %v2469_v1 }
  0x1a   :  { %606 = vmatpush.msrb.mxu2 %v2580_v18 }
  0x1b   :  { %645 = vmatpush.msrb.mxu3 %v2553_v8  ;;  %2249 = vset.pattern.permute.xlu1 %v2468_v0 }
  0x1d   :  { %646 = vmatpush.msrb.mxu3 %v2566_v13 }
  0x6a   :  { %v63_v41 = vpop.permute.xlu2 %62 }
  0x6b   :  { %v103_v43 = vmul.f32 %v2624_v40, %v63_v41 }
  0x7a   :  { %v123_v25 = vpop.permute.xlu0 %122 }
  0x7b   :  { %v161_v31 = vmul.f32 %v2609_v28, %v123_v25 }
  0x7c   :  { %v220_v27 = vpop.permute.xlu1 %219 }
  0x7d   :  { %v251_v34 = vmul.f32 %v2614_v32, %v220_v27 }
  0x83   :  { %v171_v30 = vpop.permute.xlu0 %170 }
  0x84   :  { %v202_v33 = vmul.f32 %v2611_v29, %v171_v30 }
  0x85   :  { %v269_v37 = vpop.permute.xlu1 %268 }
  0x86   :  { %v210_v35 = vadd.f32 %v202_v33, %v161_v31  ;;  %v300_v39 = vmul.f32 %v2618_v36, %v269_v37 }
  0x88   :  { %v259_v38 = vadd.f32 %v251_v34, %v210_v35 }
  0x8a   :  { %v308_v42 = vadd.f32 %v300_v39, %v259_v38 }
  0x8c   :  { %v423_v24 = vpop.f32.mrf.mxu1  ;;  %v316_v45 = vadd.f32 %v308_v42, %v103_v43 }
  0x8e   :  { %v328_v46 = vadd.f32 %v2630_v44, %v316_v45 }
  0x8f   :  { %v383_v51 = vpop.f32.mrf.mxu0 }
  0x90   :  { %v386_v52 = vadd.f32 %v383_v51, %v328_v46 }
  0x91   :  { %v467_v23 = vpop.f32.mrf.mxu2 }
  0x92   :  { %471 = vrot.lane.b32.xlu2 %v467_v23, %s2473_s23  ;;  %v2158_v53 = vmul.f32 -1.442695, %v386_v52 }
  0x99   :  { %v493_v50 = vpop.f32.mrf.mxu3 }
  0x9a   :  { %427 = vrot.lane.b32.xlu2 %v423_v24, %s2474_s24 }
  0xec   :  { %v472_v47 = vpop.permute.xlu2 %471 }
  0xed   :  { %v474_v48 = vadd.f32 %v472_v47, %v328_v46 }
  0xef   :  { %2286 = vtanh.f32 %v474_v48 }
  0xf0   :  { %2288 = vpow2.f32 %v2158_v53 }
  0xf4   :  { %v428_v24 = vpop.permute.xlu2 %427 }
  0xf5   :  { %v2287_v49 = vpop.eup %2286  ;;  %v430_v25 = vadd.f32 %v428_v24, %v328_v46 }
  0xf6   :  { %522 = vrot.lane.b32.xlu1 %v2287_v49, %s2473_s23  ;;  %v2289_v54 = vpop.eup %2288 }
  0xf7   :  { %v390_v55 = vadd.f32 1.0, %v2289_v54  ;;  %v2159_v26 = vmul.f32 -1.442695, %v430_v25 }
  0xf9   :  { %2290 = vrcp.f32 %v390_v55  ;;  %vm396_vm0 = vweird.f32 %v390_v55  ;;  %v402_v60 = vand.u32 2147483648, %v390_v55  ;;  %v400_v62 = vand.u32 2147483647, %v390_v55 }
  0xfa   :  { %2292 = vpow2.f32 %v2159_v26 }
  0xfb   :  { %v403_v63 = vor.u32 1.1754944e-38, %v402_v60  ;;  %vm401_vm3 = vcmp.eq.f32.partialorder %v400_v62, 8.507059e+37  ;;  %v2680_v60 = vld [vmem:[%s3225_s7] sm:$0xff] }
  0xfe   :  { %497 = vrot.lane.b32.xlu1 %v493_v50, %s2475_s30 }
  0xff   :  { %v2291_v56 = vpop.eup %2290 }
 0x100   :  { %v392_v57 = vmul.f32 %v2291_v56, %v390_v55  ;;  %vm397_vm1 = vweird.f32 %v2291_v56  ;;  %v2293_v27 = vpop.eup %2292  ;;  %v2643_v55 = vld [vmem:[%s3226_s8 + $0x8] sm:$0xff] }
 0x101   :  { %vm398_vm2 = vmor %vm396_vm0, %vm397_vm1  ;;  %v434_v30 = vadd.f32 1.0, %v2293_v27  ;;  %556 = vmatpush.msrb.mxu0 %v2643_v55  ;;  %781 = vmatpush.msra.mxu2 %v2643_v55 }
 0x102   :  { %v393_v58 = vsub.f32 1.0, %v392_v57  ;;  %v2657_v57 = vld [vmem:[%s3225_s7 + $0x18] sm:$0xff] }
 0x103   :  { %2294 = vrcp.f32 %v434_v30  ;;  %v446_v38 = vand.u32 2147483648, %v434_v30  ;;  %vm440_vm5 = vweird.f32 %v434_v30  ;;  %v444_v39 = vand.u32 2147483647, %v434_v30  ;;  %579 = vmatpush.msrb.mxu1 %v2657_v57  ;;  %804 = vmatpush.msra.mxu3 %v2657_v57 }
 0x104   :  { %v394_v59 = vmul.f32 %v2291_v56, %v393_v58  ;;  %v2662_v58 = vld [vmem:[%s3225_s7 + $0x10] sm:$0xff] }
 0x105   :  { %v447_v42 = vor.u32 1.1754944e-38, %v446_v38  ;;  %vm445_vm7 = vcmp.eq.f32.partialorder %v444_v39, 8.507059e+37  ;;  %580 = vmatpush.msrb.mxu1 %v2662_v58  ;;  %805 = vmatpush.msra.mxu3 %v2662_v58 }
 0x106   :  { %v395_v61 = vadd.f32 %v2291_v56, %v394_v59  ;;  %v2671_v59 = vld [vmem:[%s3225_s7 + $0x8] sm:$0xff] }
 0x107   :  { %581 = vmatpush.msrb.mxu1 %v2671_v59  ;;  %806 = vmatpush.msra.mxu3 %v2671_v59 }
 0x108   :  { %v399_v7 = vsel %vm398_vm2, %v2291_v56, %v395_v61  ;;  %v2648_v56 = vld [vmem:[%s3226_s8] sm:$0xff] }
 0x109   :  { %v404_v16 = vsel %vm401_vm3, %v403_v63, %v399_v7  ;;  %v2295_v31 = vpop.eup %2294  ;;  %557 = vmatpush.msrb.mxu0 %v2648_v56  ;;  %782 = vmatpush.msra.mxu2 %v2648_v56 }
 0x10a   :  { %v436_v33 = vmul.f32 %v2295_v31, %v434_v30  ;;  %vm441_vm4 = vweird.f32 %v2295_v31  ;;  %582 = vmatpush.msrb.mxu1 %v2680_v60  ;;  %807 = vmatpush.msra.mxu3 %v2680_v60 }
 0x10b   :  { %vm442_vm6 = vmor %vm440_vm5, %vm441_vm4  ;;  %687 = vmatpush.msra.mxu0 %v2537_v2 }
 0x10c   :  { %v437_v34 = vsub.f32 1.0, %v436_v33  ;;  %713 = vmatpush.msra.mxu1 %v2563_v12  ;;  %v52_v33 = vld [vmem:[%s3218_s0 + $0x2] sm:$0x3] }
 0x10d   :  { %688 = vmatpush.msra.mxu0 %v2539_v3 }
 0x10e   :  { %v438_v35 = vmul.f32 %v2295_v31, %v437_v34  ;;  %714 = vmatpush.msra.mxu1 %v2574_v15 }
 0x10f   :  { %689 = vmatpush.msra.mxu0 %v2546_v6 }
 0x110   :  { %v439_v37 = vadd.f32 %v2295_v31, %v438_v35  ;;  %715 = vmatpush.msra.mxu1 %v2584_v19 }
 0x111   :  { %690 = vmatpush.msra.mxu0 %v2559_v11 }
 0x112   :  { %v443_v41 = vsel %vm442_vm6, %v2295_v31, %v439_v37  ;;  %716 = vmatpush.msra.mxu1 %v2588_v21  ;;  %v112_v31 = vld [vmem:[%s3219_s1 + $0x2] sm:$0x3]  ;;  %v2735_v37 = vld [vmem:[%s3227_s9] ss:$0 sm:$0xff] }
 0x113   :  { %v448_v43 = vsel %vm445_vm7, %v447_v42, %v443_v41  ;;  %127 = vperm.xlu1 %2249, %v112_v31  }
 0x114   :  { %v520_v45 = vmul.f32 0.0, %v448_v43 }
 0x11b   :  { %2252 = vset.pattern.permute.xlu1 %v2472_v22 }
 0x11c   :  { %272 = vperm.xlu1 %2252, %v112_v31  }
 0x124   :  { %2255 = vset.pattern.permute.xlu1 %v2469_v1 }
 0x168   :  { %v523_v17 = vpop.permute.xlu1 %522 }
 0x169   :  { %v525_v23 = vmul.f32 %v523_v17, %v404_v16 }
 0x16b   :  { %527 = vrot.lane.b32.xlu0 %v525_v23, %s2474_s24 }
 0x170   :  { %v498_v50 = vpop.permute.xlu1 %497 }
 0x171   :  { %v500_v51 = vadd.f32 %v498_v50, %v328_v46  ;;  %v537_v46 = vld [vmem:[%s3220_s2] sm:$0x3] }
 0x172   :  { %2161 = vmatmul.msk.f32.vlgmr.msrb.gmra.mxu0 %vm538_vm8, %v537_v46 }
 0x173   :  { %v2160_v52 = vmul.f32 -1.442695, %v500_v51  ;;  %825 = vmatpush.msrb.mxu0 %v2555_v9 }
 0x175   :  { %826 = vmatpush.msrb.mxu0 %v2557_v10 }
 0x177   :  { %827 = vmatpush.msrb.mxu0 %v2568_v14 }
 0x179   :  { %828 = vmatpush.msrb.mxu0 %v2580_v18 }
 0x1dd   :  { %v528_v47 = vpop.permute.xlu0 %527 }
 0x1de   :  { %v2636_v48 = vadd.f32 %v528_v47, %v520_v45  ;;  %v128_v45 = vpop.permute.xlu1 %127 }
 0x1e0   :  { %2296 = vtanh.f32 %v2636_v48 }
 0x1e1   :  { %2298 = vpow2.f32 %v2160_v52 }
 0x1e6   :  { %v2297_v49 = vpop.eup %2296 }
 0x1e7   :  { %533 = vrot.lane.b32.xlu2 %v2297_v49, %s2473_s23  ;;  %v2299_v53 = vpop.eup %2298  ;;  %v162_v49 = vmul.f32 %v2609_v28, %v128_v45 }
 0x1e8   :  { %v504_v54 = vadd.f32 1.0, %v2299_v53 }
 0x1ea   :  { %2300 = vrcp.f32 %v504_v54  ;;  %v516_v17 = vand.u32 2147483648, %v504_v54  ;;  %vm510_vm10 = vweird.f32 %v504_v54  ;;  %v514_v23 = vand.u32 2147483647, %v504_v54 }
 0x1ec   :  { %v517_v25 = vor.u32 1.1754944e-38, %v516_v17  ;;  %vm515_vm12 = vcmp.eq.f32.partialorder %v514_v23, 8.507059e+37 }
 0x1ef   :  { %174 = vperm.xlu2 %2250, %v112_v31   ;;  %v559_v35 = vpop.f32.mrf.mxu0 }
 0x1f0   :  { %v2301_v61 = vpop.eup %2300 }
 0x1f1   :  { %v506_v62 = vmul.f32 %v2301_v61, %v504_v54  ;;  %vm511_vm9 = vweird.f32 %v2301_v61  ;;  %v273_v54 = vpop.permute.xlu1 %272 }
 0x1f2   :  { %vm512_vm11 = vmor %vm510_vm10, %vm511_vm9 }
 0x1f3   :  { %v507_v63 = vsub.f32 1.0, %v506_v62 }
 0x1f5   :  { %v508_v7 = vmul.f32 %v2301_v61, %v507_v63 }
 0x1f7   :  { %v509_v16 = vadd.f32 %v2301_v61, %v508_v7  ;;  %2253 = vset.pattern.permute.xlu2 %v2468_v0 }
 0x1f8   :  { %67 = vperm.xlu2 %2253, %v52_v33  }
 0x1f9   :  { %v513_v24 = vsel %vm512_vm11, %v2301_v61, %v509_v16  ;;  %v301_v61 = vmul.f32 %v2618_v36, %v273_v54 }
 0x1fa   :  { %v518_v26 = vsel %vm515_vm12, %v517_v25, %v513_v24 }
 0x241   :  { %v534_v27 = vpop.permute.xlu2 %533 }
 0x242   :  { %v536_v30 = vmul.f32 %v534_v27, %v518_v26  ;;  %v2757_v27 = vld [vmem:[%s3219_s1 + $0x4] sm:$0x3] }
 0x244   :  { %563 = vrot.lane.b32.xlu0 %v536_v30, %s2474_s24 }
 0x249   :  { %v175_v47 = vpop.permute.xlu2 %174 }
 0x24a   :  { %v203_v50 = vmul.f32 %v2611_v29, %v175_v47 }
 0x24c   :  { %223 = vperm.xlu0 %2251, %v112_v31   ;;  %v211_v52 = vadd.f32 %v203_v50, %v162_v49 }
 0x252   :  { %v68_v62 = vpop.permute.xlu2 %67 }
 0x253   :  { %v104_v7 = vmul.f32 %v2624_v40, %v68_v62 }
 0x254   :  { %2254 = vset.pattern.permute.xlu0 %v2471_v20 }
 0x2b6   :  { %v564_v34 = vpop.permute.xlu0 %563 }
 0x2b7   :  { %2162 = vmatmul.msk.f32.vlgmr.msrb.gmra.mxu1 %vm362_vm13, %v564_v34  ;;  %2163 = vmatmul.msk.f32.vlgmr.msrb.gmra.mxu2 %vm362_vm13, %v564_v34 }
 0x2b8   :  { %2165 = vmatmul.msk.f32.vlgmr.msrb.gmra.mxu3 %vm362_vm13, %v564_v34  ;;  %2167 = vmatmul.msk.f32.vlgmr.msra.gmra.mxu0 %vm362_vm13, %v564_v34 }
 0x2b9   :  { %909 = vmatpush.msrb.mxu2 %v2537_v2  ;;  %865 = vmatpush.msrb.mxu1 %v2542_v4 }
 0x2ba   :  { %935 = vmatpush.msrb.mxu3 %v2563_v12  ;;  %1003 = vmatpush.msra.mxu0 %v2643_v55 }
 0x2bb   :  { %910 = vmatpush.msrb.mxu2 %v2539_v3  ;;  %866 = vmatpush.msrb.mxu1 %v2544_v5 }
 0x2bc   :  { %936 = vmatpush.msrb.mxu3 %v2574_v15  ;;  %1004 = vmatpush.msra.mxu0 %v2648_v56 }
 0x2bd   :  { %911 = vmatpush.msrb.mxu2 %v2546_v6  ;;  %867 = vmatpush.msrb.mxu1 %v2553_v8 }
 0x2be   :  { %937 = vmatpush.msrb.mxu3 %v2584_v19  ;;  %v224_v51 = vpop.permute.xlu0 %223 }
 0x2bf   :  { %2168 = vmatmul.msk.f32.vlgmr.msra.gmra.mxu1 %vm362_vm13, %v564_v34  ;;  %912 = vmatpush.msrb.mxu2 %v2559_v11  ;;  %v252_v53 = vmul.f32 %v2614_v32, %v224_v51 }
 0x2c0   :  { %868 = vmatpush.msrb.mxu1 %v2566_v13  ;;  %938 = vmatpush.msrb.mxu3 %v2588_v21 }
 0x2c1   :  { %v260_v46 = vadd.f32 %v252_v53, %v211_v52 }
 0x2c2   :  { %1026 = vmatpush.msra.mxu1 %v2657_v57 }
 0x2c3   :  { %v309_v63 = vadd.f32 %v301_v61, %v260_v46 }
 0x2c4   :  { %1027 = vmatpush.msra.mxu1 %v2662_v58 }
 0x2c5   :  { %v317_v16 = vadd.f32 %v309_v63, %v104_v7 }
 0x2c6   :  { %1028 = vmatpush.msra.mxu1 %v2671_v59 }
 0x2c7   :  { %v2749_v17 = vadd.f32 %v2630_v44, %v317_v16 }
 0x2c8   :  { %1029 = vmatpush.msra.mxu1 %v2680_v60 }
 0x334   :  { %v584_v38 = vpop.f32.mrf.mxu1 }
 0x335   :  { %v585_v39 = vadd.f32 %v584_v38, %v559_v35  ;;  %v692_v41 = vpop.f32.mrf.mxu0 }
 0x336   :  { %696 = vrot.lane.b32.xlu1 %v692_v41, %s2473_s23 }
 0x337   :  { %v590_v42 = vadd.f32 %v2735_v37, %v585_v39 }
 0x339   :  { %2145 = vst [vmem:[%s3228_s10] sm:$0x3] %v590_v42 }
 0x33a   :  { %v608_v30 = vpop.f32.mrf.mxu2 }
 0x33b   :  { %v648_v43 = vpop.f32.mrf.mxu3  ;;  %v611_v31 = vadd.f32 %v608_v30, %v2749_v17 }
 0x33c   :  { %652 = vrot.lane.b32.xlu0 %v648_v43, %s2474_s24  ;;  %v718_v26 = vpop.f32.mrf.mxu1 }
 0x33d   :  { %v2164_v33 = vmul.f32 -1.442695, %v611_v31 }
 0x3a8   :  { %v697_v23 = vpop.permute.xlu1 %696 }
 0x3a9   :  { %v699_v24 = vadd.f32 %v697_v23, %v2749_v17 }
 0x3ab   :  { %2302 = vtanh.f32 %v699_v24 }
 0x3ac   :  { %2304 = vpow2.f32 %v2164_v33 }
 0x3ae   :  { %v653_v54 = vpop.permute.xlu0 %652 }
 0x3af   :  { %v655_v46 = vadd.f32 %v653_v54, %v2749_v17 }
 0x3b1   :  { %v2303_v25 = vpop.eup %2302  ;;  %v2166_v61 = vmul.f32 -1.442695, %v655_v46 }
 0x3b2   :  { %747 = vrot.lane.b32.xlu2 %v2303_v25, %s2473_s23  ;;  %v2305_v34 = vpop.eup %2304 }
 0x3b3   :  { %v615_v35 = vadd.f32 1.0, %v2305_v34 }
 0x3b5   :  { %2306 = vrcp.f32 %v615_v35  ;;  %v627_v45 = vand.u32 2147483648, %v615_v35  ;;  %vm621_vm15 = vweird.f32 %v615_v35  ;;  %v625_v47 = vand.u32 2147483647, %v615_v35 }
 0x3b6   :  { %2308 = vpow2.f32 %v2166_v61 }
 0x3b7   :  { %v628_v50 = vor.u32 1.1754944e-38, %v627_v45  ;;  %vm626_vm1 = vcmp.eq.f32.partialorder %v625_v47, 8.507059e+37 }
 0x3ba   :  { %722 = vrot.lane.b32.xlu2 %v718_v26, %s2475_s30 }
 0x3bb   :  { %v2307_v38 = vpop.eup %2306 }
 0x3bc   :  { %v617_v39 = vmul.f32 %v2307_v38, %v615_v35  ;;  %vm622_vm14 = vweird.f32 %v2307_v38  ;;  %v2309_v62 = vpop.eup %2308 }
 0x3bd   :  { %vm623_vm0 = vmor %vm621_vm15, %vm622_vm14  ;;  %v659_v63 = vadd.f32 1.0, %v2309_v62 }
 0x3be   :  { %v618_v41 = vsub.f32 1.0, %v617_v39 }
 0x3bf   :  { %2310 = vrcp.f32 %v659_v63  ;;  %v671_v26 = vand.u32 2147483648, %v659_v63  ;;  %vm665_vm3 = vweird.f32 %v659_v63  ;;  %v669_v30 = vand.u32 2147483647, %v659_v63 }
 0x3c0   :  { %v619_v42 = vmul.f32 %v2307_v38, %v618_v41 }
 0x3c1   :  { %v672_v33 = vor.u32 1.1754944e-38, %v671_v26  ;;  %vm670_vm5 = vcmp.eq.f32.partialorder %v669_v30, 8.507059e+37 }
 0x3c2   :  { %132 = vperm.xlu2 %2253, %v2757_v27   ;;  %v620_v43 = vadd.f32 %v2307_v38, %v619_v42 }
 0x3c4   :  { %v624_v49 = vsel %vm623_vm0, %v2307_v38, %v620_v43 }
 0x3c5   :  { %v629_v52 = vsel %vm626_vm1, %v628_v50, %v624_v49  ;;  %v2311_v7 = vpop.eup %2310 }
 0x3c6   :  { %v661_v16 = vmul.f32 %v2311_v7, %v659_v63  ;;  %vm666_vm2 = vweird.f32 %v2311_v7 }
 0x3c7   :  { %vm667_vm4 = vmor %vm665_vm3, %vm666_vm2 }
 0x3c8   :  { %v662_v23 = vsub.f32 1.0, %v661_v16 }
 0x3ca   :  { %2256 = vset.pattern.permute.xlu2 %v2472_v22  ;;  %v663_v24 = vmul.f32 %v2311_v7, %v662_v23  ;;  %v53_v23 = vld [vmem:[%s3218_s0 + $0x4] sm:$0x3] }
 0x3cb   :  { %276 = vperm.xlu2 %2256, %v2757_v27  }
 0x3cc   :  { %v664_v25 = vadd.f32 %v2311_v7, %v663_v24 }
 0x3ce   :  { %v668_v31 = vsel %vm667_vm4, %v2311_v7, %v664_v25 }
 0x3cf   :  { %v673_v34 = vsel %vm670_vm5, %v672_v33, %v668_v31 }
 0x3d0   :  { %v745_v35 = vmul.f32 %v673_v34, %v2636_v48 }
 0x3d3   :  { %2260 = vset.pattern.permute.xlu2 %v2469_v1 }
 0x40c   :  { %v748_v51 = vpop.permute.xlu2 %747 }
 0x40d   :  { %v750_v53 = vmul.f32 %v748_v51, %v629_v52  ;;  %v2170_v52 = vld [vmem:[%s3220_s2 + $0x2] sm:$0x3] }
 0x40e   :  { %2171 = vmatmul.msk.f32.vlgmr.msra.gmra.mxu2 %vm538_vm8, %v2170_v52 }
 0x40f   :  { %752 = vrot.lane.b32.xlu1 %v750_v53, %s2474_s24  ;;  %1047 = vmatpush.msra.mxu2 %v2555_v9 }
 0x411   :  { %1048 = vmatpush.msra.mxu2 %v2557_v10 }
 0x413   :  { %1049 = vmatpush.msra.mxu2 %v2568_v14 }
 0x414   :  { %v723_v42 = vpop.permute.xlu2 %722 }
 0x415   :  { %v725_v43 = vadd.f32 %v723_v42, %v2749_v17  ;;  %1050 = vmatpush.msra.mxu2 %v2580_v18 }
 0x417   :  { %v2169_v45 = vmul.f32 -1.442695, %v725_v43 }
 0x481   :  { %v753_v38 = vpop.permute.xlu1 %752 }
 0x482   :  { %v2767_v39 = vadd.f32 %v753_v38, %v745_v35 }
 0x484   :  { %2312 = vtanh.f32 %v2767_v39 }
 0x485   :  { %2314 = vpow2.f32 %v2169_v45 }
 0x48a   :  { %v2313_v41 = vpop.eup %2312 }
 0x48b   :  { %758 = vrot.lane.b32.xlu0 %v2313_v41, %s2473_s23  ;;  %v2315_v47 = vpop.eup %2314 }
 0x48c   :  { %v729_v49 = vadd.f32 1.0, %v2315_v47 }
 0x48e   :  { %2316 = vrcp.f32 %v729_v49  ;;  %v741_v54 = vand.u32 2147483648, %v729_v49  ;;  %vm735_vm7 = vweird.f32 %v729_v49  ;;  %v739_v46 = vand.u32 2147483647, %v729_v49 }
 0x490   :  { %v742_v62 = vor.u32 1.1754944e-38, %v741_v54  ;;  %vm740_vm10 = vcmp.eq.f32.partialorder %v739_v46, 8.507059e+37 }
 0x493   :  { %178 = vperm.xlu0 %2254, %v2757_v27  }
 0x494   :  { %v2317_v48 = vpop.eup %2316 }
 0x495   :  { %v731_v50 = vmul.f32 %v2317_v48, %v729_v49  ;;  %vm736_vm6 = vweird.f32 %v2317_v48 }
 0x496   :  { %vm737_vm9 = vmor %vm735_vm7, %vm736_vm6 }
 0x497   :  { %v732_v51 = vsub.f32 1.0, %v731_v50 }
 0x499   :  { %v733_v53 = vmul.f32 %v2317_v48, %v732_v51 }
 0x49b   :  { %2258 = vset.pattern.permute.xlu0 %v2468_v0  ;;  %v734_v17 = vadd.f32 %v2317_v48, %v733_v53 }
 0x49d   :  { %v738_v61 = vsel %vm737_vm9, %v2317_v48, %v734_v17 }
 0x49e   :  { %v743_v63 = vsel %vm740_vm10, %v742_v62, %v738_v61 }
 0x4fd   :  { %v759_v7 = vpop.permute.xlu0 %758 }
 0x4fe   :  { %v761_v16 = vmul.f32 %v759_v7, %v743_v63 }
 0x500   :  { %788 = vrot.lane.b32.xlu1 %v761_v16, %s2474_s24 }
 0x508   :  { %227 = vperm.xlu1 %2255, %v2757_v27   ;;  %v179_v27 = vpop.permute.xlu0 %178 }
 0x509   :  { %v204_v25 = vmul.f32 %v2611_v29, %v179_v27 }
 0x510   :  { %2257 = vset.pattern.permute.xlu1 %v2468_v0 }
 0x511   :  { %72 = vperm.xlu1 %2257, %v53_v23  }
 0x519   :  { %2259 = vset.pattern.permute.xlu1 %v2471_v20 }
 0x572   :  { %v789_v24 = vpop.permute.xlu1 %788 }
 0x573   :  { %2172 = vmatmul.msk.f32.vlgmr.msra.gmra.mxu3 %vm362_vm13, %v789_v24  ;;  %2173 = vmatmul.msk.f32.vlgmr.msrb.gmra.mxu0 %vm362_vm13, %v789_v24 }
 0x574   :  { %2175 = vmatmul.msk.f32.vlgmr.msrb.gmra.mxu1 %vm362_vm13, %v789_v24  ;;  %2177 = vmatmul.msk.f32.vlgmr.msrb.gmra.mxu2 %vm362_vm13, %v789_v24 }
 0x575   :  { %1131 = vmatpush.msrb.mxu0 %v2537_v2  ;;  %1087 = vmatpush.msra.mxu3 %v2542_v4  ;;  %v784_v2 = vpop.f32.mrf.mxu2 }
 0x576   :  { %1157 = vmatpush.msrb.mxu1 %v2563_v12  ;;  %1225 = vmatpush.msrb.mxu2 %v2643_v55 }
 0x577   :  { %1132 = vmatpush.msrb.mxu0 %v2539_v3  ;;  %1088 = vmatpush.msra.mxu3 %v2544_v5 }
 0x578   :  { %1158 = vmatpush.msrb.mxu1 %v2574_v15  ;;  %1226 = vmatpush.msrb.mxu2 %v2648_v56 }
 0x579   :  { %1133 = vmatpush.msrb.mxu0 %v2546_v6  ;;  %1089 = vmatpush.msra.mxu3 %v2553_v8 }
 0x57a   :  { %1159 = vmatpush.msrb.mxu1 %v2584_v19 }
 0x57b   :  { %2178 = vmatmul.msk.f32.vlgmr.msrb.gmra.mxu3 %vm362_vm13, %v789_v24  ;;  %1134 = vmatpush.msrb.mxu0 %v2559_v11  ;;  %v133_v11 = vpop.permute.xlu2 %132 }
 0x57c   :  { %1090 = vmatpush.msra.mxu3 %v2566_v13  ;;  %1160 = vmatpush.msrb.mxu1 %v2588_v21  ;;  %v228_v13 = vpop.permute.xlu1 %227  ;;  %v163_v26 = vmul.f32 %v2609_v28, %v133_v11 }
 0x57d   :  { %v253_v30 = vmul.f32 %v2614_v32, %v228_v13 }
 0x57e   :  { %1248 = vmatpush.msrb.mxu3 %v2657_v57  ;;  %v212_v33 = vadd.f32 %v204_v25, %v163_v26 }
 0x580   :  { %1249 = vmatpush.msrb.mxu3 %v2662_v58  ;;  %v261_v35 = vadd.f32 %v253_v30, %v212_v33 }
 0x582   :  { %1250 = vmatpush.msrb.mxu3 %v2671_v59 }
 0x583   :  { %v277_v31 = vpop.permute.xlu2 %276 }
 0x584   :  { %1251 = vmatpush.msrb.mxu3 %v2680_v60  ;;  %v73_v34 = vpop.permute.xlu1 %72  ;;  %v302_v38 = vmul.f32 %v2618_v36, %v277_v31 }
 0x585   :  { %v105_v41 = vmul.f32 %v2624_v40, %v73_v34 }
 0x586   :  { %v310_v42 = vadd.f32 %v302_v38, %v261_v35 }
 0x588   :  { %v318_v43 = vadd.f32 %v310_v42, %v105_v41 }
 0x58a   :  { %v330_v45 = vadd.f32 %v2630_v44, %v318_v43 }
 0x5f0   :  { %v830_v51 = vpop.f32.mrf.mxu0 }
 0x5f1   :  { %v870_v3 = vpop.f32.mrf.mxu1  ;;  %v833_v52 = vadd.f32 %v830_v51, %v330_v45 }
 0x5f2   :  { %874 = vrot.lane.b32.xlu1 %v870_v3, %s2474_s24 }
 0x5f3   :  { %v2174_v53 = vmul.f32 -1.442695, %v833_v52 }
 0x5f6   :  { %v809_v4 = vpop.f32.mrf.mxu3 }
 0x5f7   :  { %v810_v5 = vadd.f32 %v809_v4, %v784_v2  ;;  %v914_v6 = vpop.f32.mrf.mxu2 }
 0x5f8   :  { %918 = vrot.lane.b32.xlu2 %v914_v6, %s2473_s23 }
 0x5f9   :  { %v812_v8 = vadd.f32 %v2735_v37, %v810_v5 }
 0x5fb   :  { %2146 = vst [vmem:[%s3228_s10 + $0x2] sm:$0x3] %v812_v8 }
 0x5fe   :  { %v940_v50 = vpop.f32.mrf.mxu3 }
 0x652   :  { %v919_v47 = vpop.permute.xlu2 %918 }
 0x653   :  { %v921_v49 = vadd.f32 %v919_v47, %v330_v45 }
 0x655   :  { %2318 = vtanh.f32 %v921_v49 }
 0x656   :  { %2320 = vpow2.f32 %v2174_v53 }
 0x65b   :  { %v2319_v48 = vpop.eup %2318 }
 0x65c   :  { %969 = vrot.lane.b32.xlu0 %v2319_v48, %s2473_s23  ;;  %v2321_v17 = vpop.eup %2320 }
 0x65d   :  { %v837_v54 = vadd.f32 1.0, %v2321_v17 }
 0x65f   :  { %2322 = vrcp.f32 %v837_v54  ;;  %v849_v16 = vand.u32 2147483648, %v837_v54  ;;  %vm843_vm12 = vweird.f32 %v837_v54  ;;  %v847_v23 = vand.u32 2147483647, %v837_v54 }
 0x661   :  { %v850_v2 = vor.u32 1.1754944e-38, %v849_v16  ;;  %vm848_vm15 = vcmp.eq.f32.partialorder %v847_v23, 8.507059e+37 }
 0x664   :  { %944 = vrot.lane.b32.xlu0 %v940_v50, %s2475_s30  ;;  %v875_v6 = vpop.permute.xlu1 %874 }
 0x665   :  { %v2323_v46 = vpop.eup %2322  ;;  %v877_v8 = vadd.f32 %v875_v6, %v330_v45  ;;  %v2867_v6 = vld [vmem:[#allocation2 + $0x30] sm:$0xff] }
 0x666   :  { %v839_v61 = vmul.f32 %v2323_v46, %v837_v54  ;;  %vm844_vm11 = vweird.f32 %v2323_v46  ;;  %v2180_v54 = vld [vmem:[%s3220_s2 + $0x4] sm:$0x3] }
 0x667   :  { %vm845_vm14 = vmor %vm843_vm12, %vm844_vm11  ;;  %v2176_v11 = vmul.f32 -1.442695, %v877_v8  ;;  %2181 = vmatmul.msk.f32.vlgmr.msra.gmra.mxu0 %vm538_vm8, %v2180_v54  ;;  %v2872_v8 = vld [vmem:[#allocation2 + $0x48] sm:$0xff] }
 0x668   :  { %v840_v62 = vsub.f32 1.0, %v839_v61  ;;  %1269 = vmatpush.msra.mxu0 %v2555_v9 }
 0x669   :  { %2324 = vpow2.f32 %v2176_v11  ;;  %v2875_v11 = vld [vmem:[#allocation2 + $0x28] sm:$0xff] }
 0x66a   :  { %v841_v63 = vmul.f32 %v2323_v46, %v840_v62  ;;  %1270 = vmatpush.msra.mxu0 %v2557_v10 }
 0x66c   :  { %v842_v7 = vadd.f32 %v2323_v46, %v841_v63  ;;  %1271 = vmatpush.msra.mxu0 %v2568_v14  ;;  %v114_v14 = vld [vmem:[%s3219_s1 + $0x6] sm:$0x3] }
 0x66d   :  { %137 = vperm.xlu0 %2258, %v114_v14  }
 0x66e   :  { %v846_v24 = vsel %vm845_vm14, %v2323_v46, %v842_v7  ;;  %1272 = vmatpush.msra.mxu0 %v2580_v18  ;;  %v54_v18 = vld [vmem:[%s3218_s0 + $0x6] sm:$0x3] }
 0x66f   :  { %v851_v4 = vsel %vm848_vm15, %v850_v2, %v846_v24  ;;  %v2325_v13 = vpop.eup %2324 }
 0x670   :  { %v881_v27 = vadd.f32 1.0, %v2325_v13 }
 0x672   :  { %2326 = vrcp.f32 %v881_v27  ;;  %v893_v34 = vand.u32 2147483648, %v881_v27  ;;  %vm887_vm1 = vweird.f32 %v881_v27  ;;  %v891_v35 = vand.u32 2147483647, %v881_v27 }
 0x674   :  { %v894_v41 = vor.u32 1.1754944e-38, %v893_v34  ;;  %vm892_vm3 = vcmp.eq.f32.partialorder %v891_v35, 8.507059e+37 }
 0x675   :  { %2265 = vset.pattern.permute.xlu0 %v2469_v1 }
 0x678   :  { %v2327_v25 = vpop.eup %2326 }
 0x679   :  { %v883_v26 = vmul.f32 %v2327_v25, %v881_v27  ;;  %vm888_vm0 = vweird.f32 %v2327_v25 }
 0x67a   :  { %vm889_vm2 = vmor %vm887_vm1, %vm888_vm0 }
 0x67b   :  { %v884_v30 = vsub.f32 1.0, %v883_v26 }
 0x67d   :  { %v885_v31 = vmul.f32 %v2327_v25, %v884_v30 }
 0x67f   :  { %v886_v33 = vadd.f32 %v2327_v25, %v885_v31 }
 0x681   :  { %v890_v38 = vsel %vm889_vm2, %v2327_v25, %v886_v33 }
 0x682   :  { %v895_v42 = vsel %vm892_vm3, %v894_v41, %v890_v38 }
 0x683   :  { %v967_v43 = vmul.f32 %v895_v42, %v2767_v39 }
 0x6ce   :  { %v970_v3 = vpop.permute.xlu0 %969 }
 0x6cf   :  { %v972_v5 = vmul.f32 %v970_v3, %v851_v4  ;;  %v2856_v3 = vld [vmem:[#allocation2 + $0x58] sm:$0xff] }
 0x6d0   :  { %v2859_v4 = vld [vmem:[#allocation2 + $0x38] sm:$0xff] }
 0x6d1   :  { %974 = vrot.lane.b32.xlu2 %v972_v5, %s2474_s24  ;;  %v2864_v5 = vld [vmem:[#allocation2 + $0x50] sm:$0xff] }
 0x6d6   :  { %v945_v50 = vpop.permute.xlu0 %944 }
 0x6d7   :  { %v947_v51 = vadd.f32 %v945_v50, %v330_v45 }
 0x6d9   :  { %v2179_v52 = vmul.f32 -1.442695, %v947_v51 }
 0x72b   :  { %v975_v47 = vpop.permute.xlu2 %974 }
 0x72c   :  { %v2828_v49 = vadd.f32 %v975_v47, %v967_v43 }
 0x72e   :  { %2328 = vtanh.f32 %v2828_v49 }
 0x72f   :  { %2330 = vpow2.f32 %v2179_v52 }
 0x734   :  { %v2329_v48 = vpop.eup %2328 }
 0x735   :  { %980 = vrot.lane.b32.xlu1 %v2329_v48, %s2473_s23  ;;  %v2331_v53 = vpop.eup %2330 }
 0x736   :  { %v951_v17 = vadd.f32 1.0, %v2331_v53 }
 0x738   :  { %2332 = vrcp.f32 %v951_v17  ;;  %v963_v63 = vand.u32 2147483648, %v951_v17  ;;  %vm957_vm5 = vweird.f32 %v951_v17  ;;  %v961_v7 = vand.u32 2147483647, %v951_v17 }
 0x73a   :  { %v964_v23 = vor.u32 1.1754944e-38, %v963_v63  ;;  %vm962_vm7 = vcmp.eq.f32.partialorder %v961_v7, 8.507059e+37 }
 0x73d   :  { %182 = vperm.xlu1 %2259, %v114_v14  }
 0x73e   :  { %v2333_v39 = vpop.eup %2332 }
 0x73f   :  { %v953_v45 = vmul.f32 %v2333_v39, %v951_v17  ;;  %vm958_vm4 = vweird.f32 %v2333_v39 }
 0x740   :  { %vm959_vm6 = vmor %vm957_vm5, %vm958_vm4 }
 0x741   :  { %v954_v46 = vsub.f32 1.0, %v953_v45 }
 0x743   :  { %v955_v61 = vmul.f32 %v2333_v39, %v954_v46 }
 0x745   :  { %v956_v62 = vadd.f32 %v2333_v39, %v955_v61  ;;  %2261 = vset.pattern.permute.xlu1 %v2472_v22 }
 0x746   :  { %280 = vperm.xlu1 %2261, %v114_v14  }
 0x747   :  { %v960_v16 = vsel %vm959_vm6, %v2333_v39, %v956_v62 }
 0x748   :  { %v965_v9 = vsel %vm962_vm7, %v964_v23, %v960_v16 }
 0x74e   :  { %2263 = vset.pattern.permute.xlu1 %v2468_v0 }
 0x7a7   :  { %v981_v24 = vpop.permute.xlu1 %980 }
 0x7a8   :  { %v983_v10 = vmul.f32 %v981_v24, %v965_v9 }
 0x7aa   :  { %1010 = vrot.lane.b32.xlu2 %v983_v10, %s2474_s24 }
 0x7b2   :  { %231 = vperm.xlu2 %2260, %v114_v14  }
 0x7ba   :  { %2262 = vset.pattern.permute.xlu2 %v2468_v0 }
 0x7bb   :  { %77 = vperm.xlu2 %2262, %v54_v18  }
 0x7c3   :  { %2264 = vset.pattern.permute.xlu2 %v2471_v20 }
 0x804   :  { %v1011_v2 = vpop.permute.xlu2 %1010 }
 0x805   :  { %2182 = vmatmul.msk.f32.vlgmr.msra.gmra.mxu1 %vm362_vm13, %v1011_v2  ;;  %2183 = vmatmul.msk.f32.vlgmr.msra.gmra.mxu2 %vm362_vm13, %v1011_v2 }
 0x806   :  { %2185 = vmatmul.msk.f32.vlgmr.msra.gmra.mxu3 %vm362_vm13, %v1011_v2  ;;  %2187 = vmatmul.msk.f32.vlgmr.msrb.gmra.mxu0 %vm362_vm13, %v1011_v2 }
 0x807   :  { %1353 = vmatpush.msra.mxu2 %v2856_v3  ;;  %1309 = vmatpush.msra.mxu1 %v2859_v4 }
 0x808   :  { %1379 = vmatpush.msra.mxu3 %v2563_v12  ;;  %1447 = vmatpush.msrb.mxu0 %v2643_v55  ;;  %v2880_v12 = vld [vmem:[#allocation2 + $0x40] sm:$0xff] }
 0x809   :  { %1354 = vmatpush.msra.mxu2 %v2864_v5  ;;  %1310 = vmatpush.msra.mxu1 %v2867_v6  ;;  %v2883_v55 = vld [vmem:[#allocation2 + $0x20] sm:$0xff] }
 0x80a   :  { %1380 = vmatpush.msra.mxu3 %v2574_v15  ;;  %1448 = vmatpush.msrb.mxu0 %v2648_v56  ;;  %v1006_v15 = vpop.f32.mrf.mxu0 }
 0x80b   :  { %1355 = vmatpush.msra.mxu2 %v2872_v8  ;;  %1311 = vmatpush.msra.mxu1 %v2875_v11 }
 0x80c   :  { %1381 = vmatpush.msra.mxu3 %v2584_v19 }
 0x80d   :  { %2188 = vmatmul.msk.f32.vlgmr.msrb.gmra.mxu1 %vm362_vm13, %v1011_v2  ;;  %1356 = vmatpush.msra.mxu2 %v2880_v12 }
 0x80e   :  { %1312 = vmatpush.msra.mxu1 %v2883_v55  ;;  %1382 = vmatpush.msra.mxu3 %v2588_v21 }
 0x810   :  { %1470 = vmatpush.msrb.mxu1 %v2657_v57  ;;  %v183_v57 = vpop.permute.xlu1 %182 }
 0x812   :  { %1471 = vmatpush.msrb.mxu1 %v2662_v58  ;;  %v138_v58 = vpop.permute.xlu0 %137 }
 0x813   :  { %v164_v25 = vmul.f32 %v2609_v28, %v138_v58 }
 0x814   :  { %1472 = vmatpush.msrb.mxu1 %v2671_v59  ;;  %v232_v59 = vpop.permute.xlu2 %231 }
 0x815   :  { %v254_v26 = vmul.f32 %v2614_v32, %v232_v59 }
 0x816   :  { %1473 = vmatpush.msrb.mxu1 %v2680_v60  ;;  %v205_v60 = vmul.f32 %v2611_v29, %v183_v57 }
 0x818   :  { %v213_v30 = vadd.f32 %v205_v60, %v164_v25  ;;  %v281_v31 = vpop.permute.xlu1 %280 }
 0x819   :  { %v303_v34 = vmul.f32 %v2618_v36, %v281_v31 }
 0x81a   :  { %v262_v33 = vadd.f32 %v254_v26, %v213_v30 }
 0x81c   :  { %v78_v35 = vpop.permute.xlu2 %77  ;;  %v311_v38 = vadd.f32 %v303_v34, %v262_v33 }
 0x81d   :  { %v106_v41 = vmul.f32 %v2624_v40, %v78_v35 }
 0x81f   :  { %v319_v42 = vadd.f32 %v311_v38, %v106_v41 }
 0x821   :  { %v331_v43 = vadd.f32 %v2630_v44, %v319_v42 }
 0x882   :  { %v1031_v19 = vpop.f32.mrf.mxu1 }
 0x883   :  { %v1032_v56 = vadd.f32 %v1031_v19, %v1006_v15  ;;  %v1136_v13 = vpop.f32.mrf.mxu0 }
 0x884   :  { %1140 = vrot.lane.b32.xlu0 %v1136_v13, %s2473_s23 }
 0x885   :  { %v1034_v27 = vadd.f32 %v2735_v37, %v1032_v56 }
 0x887   :  { %2147 = vst [vmem:[%s3228_s10 + $0x4] sm:$0x3] %v1034_v27 }
 0x888   :  { %v1052_v52 = vpop.f32.mrf.mxu2 }
 0x889   :  { %v1092_v21 = vpop.f32.mrf.mxu3  ;;  %v1055_v53 = vadd.f32 %v1052_v52, %v331_v43  ;;  %v2927_v52 = vld [vmem:[#allocation2] sm:$0xff] }
 0x88a   :  { %1096 = vrot.lane.b32.xlu2 %v1092_v21, %s2474_s24  ;;  %v1162_v51 = vpop.f32.mrf.mxu1 }
 0x88b   :  { %v2184_v17 = vmul.f32 -1.442695, %v1055_v53 }
 0x8e4   :  { %v1097_v10 = vpop.permute.xlu2 %1096 }
 0x8e5   :  { %v1099_v14 = vadd.f32 %v1097_v10, %v331_v43  ;;  %v2961_v10 = vld [vmem:[%s3226_s8] sm:$0xff] }
 0x8e7   :  { %v2186_v18 = vmul.f32 -1.442695, %v1099_v14  ;;  %v2966_v14 = vld [vmem:[#allocation2 + $0x68] sm:$0xff] }
 0x8f6   :  { %v1141_v47 = vpop.permute.xlu0 %1140 }
 0x8f7   :  { %v1143_v48 = vadd.f32 %v1141_v47, %v331_v43  ;;  %v2190_v47 = vld [vmem:[%s3220_s2 + $0x6] sm:$0x3] }
 0x8f8   :  { %2191 = vmatmul.msk.f32.vlgmr.msrb.gmra.mxu2 %vm538_vm8, %v2190_v47 }
 0x8f9   :  { %2334 = vtanh.f32 %v1143_v48  ;;  %v2918_v48 = vld [vmem:[#allocation2 + $0x18] sm:$0xff] }
 0x8fa   :  { %2336 = vpow2.f32 %v2184_v17  ;;  %1491 = vmatpush.msrb.mxu2 %v2918_v48 }
 0x8ff   :  { %v2335_v50 = vpop.eup %2334 }
 0x900   :  { %1191 = vrot.lane.b32.xlu1 %v2335_v50, %s2473_s23  ;;  %v2337_v54 = vpop.eup %2336  ;;  %v2924_v50 = vld [vmem:[#allocation2 + $0x8] sm:$0xff] }
 0x901   :  { %v1059_v39 = vadd.f32 1.0, %v2337_v54 }
 0x903   :  { %2338 = vrcp.f32 %v1059_v39  ;;  %v1071_v62 = vand.u32 2147483648, %v1059_v39  ;;  %vm1065_vm10 = vweird.f32 %v1059_v39  ;;  %v1069_v63 = vand.u32 2147483647, %v1059_v39 }
 0x904   :  { %2340 = vpow2.f32 %v2186_v18  ;;  %v2972_v18 = vld [vmem:[#allocation2 + $0x60] sm:$0xff] }
 0x905   :  { %v1072_v16 = vor.u32 1.1754944e-38, %v1071_v62  ;;  %vm1070_vm12 = vcmp.eq.f32.partialorder %v1069_v63, 8.507059e+37 }
 0x908   :  { %1166 = vrot.lane.b32.xlu1 %v1162_v51, %s2475_s30 }
 0x909   :  { %v2339_v40 = vpop.eup %2338 }
 0x90a   :  { %v1061_v45 = vmul.f32 %v2339_v40, %v1059_v39  ;;  %vm1066_vm9 = vweird.f32 %v2339_v40  ;;  %v2341_v2 = vpop.eup %2340 }
 0x90b   :  { %vm1067_vm11 = vmor %vm1065_vm10, %vm1066_vm9  ;;  %v1103_v15 = vadd.f32 1.0, %v2341_v2  ;;  %v2978_v2 = vld [vmem:[%s3225_s7 + $0x18] sm:$0xff] }
 0x90c   :  { %v1062_v46 = vsub.f32 1.0, %v1061_v45 }
 0x90d   :  { %2342 = vrcp.f32 %v1103_v15  ;;  %v1115_v57 = vand.u32 2147483648, %v1103_v15  ;;  %vm1109_vm15 = vweird.f32 %v1103_v15  ;;  %v1113_v58 = vand.u32 2147483647, %v1103_v15 }
 0x90e   :  { %v1063_v44 = vmul.f32 %v2339_v40, %v1062_v46 }
 0x90f   :  { %v1116_v60 = vor.u32 1.1754944e-38, %v1115_v57  ;;  %vm1114_vm1 = vcmp.eq.f32.partialorder %v1113_v58, 8.507059e+37 }
 0x910   :  { %v1064_v61 = vadd.f32 %v2339_v40, %v1063_v44 }
 0x912   :  { %v1068_v7 = vsel %vm1067_vm11, %v2339_v40, %v1064_v61 }
 0x913   :  { %v1073_v9 = vsel %vm1070_vm12, %v1072_v16, %v1068_v7  ;;  %v2343_v19 = vpop.eup %2342  ;;  %v55_v7 = vld [vmem:[%s3218_s0 + $0x8] sm:$0x3] }
 0x914   :  { %v1105_v56 = vmul.f32 %v2343_v19, %v1103_v15  ;;  %vm1110_vm14 = vweird.f32 %v2343_v19  ;;  %v2984_v15 = vld [vmem:[%s3225_s7 + $0x10] sm:$0xff] }
 0x915   :  { %vm1111_vm0 = vmor %vm1109_vm15, %vm1110_vm14 }
 0x916   :  { %v1106_v13 = vsub.f32 1.0, %v1105_v56  ;;  %v2996_v56 = vld [vmem:[%s3225_s7] sm:$0xff] }
 0x918   :  { %v1107_v27 = vmul.f32 %v2343_v19, %v1106_v13 }
 0x91a   :  { %v1108_v21 = vadd.f32 %v2343_v19, %v1107_v27 }
 0x91c   :  { %v1112_v59 = vsel %vm1111_vm0, %v2343_v19, %v1108_v21  ;;  %v2990_v19 = vld [vmem:[%s3225_s7 + $0x8] sm:$0xff] }
 0x91d   :  { %v1117_v25 = vsel %vm1114_vm1, %v1116_v60, %v1112_v59 }
 0x91e   :  { %v1189_v26 = vmul.f32 %v1117_v25, %v2828_v49  ;;  %v115_v49 = vld [vmem:[%s3219_s1 + $0x8] sm:$0x3] }
 0x91f   :  { %142 = vperm.xlu1 %2263, %v115_v49  }
 0x927   :  { %2266 = vset.pattern.permute.xlu1 %v2472_v22 }
 0x928   :  { %284 = vperm.xlu1 %2266, %v115_v49  }
 0x930   :  { %2269 = vset.pattern.permute.xlu1 %v2469_v1 }
 0x972   :  { %v1192_v23 = vpop.permute.xlu1 %1191 }
 0x973   :  { %v1194_v24 = vmul.f32 %v1192_v23, %v1073_v9  ;;  %v2944_v23 = vld [vmem:[#allocation2 + $0x78] sm:$0xff]  ;;  %v2950_v9 = vld [vmem:[%s3226_s8 + $0x8] sm:$0xff] }
 0x975   :  { %1196 = vrot.lane.b32.xlu0 %v1194_v24, %s2474_s24  ;;  %v2955_v24 = vld [vmem:[#allocation2 + $0x70] sm:$0xff] }
 0x97a   :  { %v1167_v34 = vpop.permute.xlu1 %1166 }
 0x97b   :  { %v1169_v35 = vadd.f32 %v1167_v34, %v331_v43  ;;  %v2921_v43 = vld [vmem:[#allocation2 + $0x10] sm:$0xff]  ;;  %v1228_v13 = vpop.f32.mrf.mxu2 }
 0x97c   :  { %1492 = vmatpush.msrb.mxu2 %v2921_v43 }
 0x97d   :  { %v2189_v38 = vmul.f32 -1.442695, %v1169_v35 }
 0x97e   :  { %1493 = vmatpush.msrb.mxu2 %v2924_v50 }
 0x980   :  { %1494 = vmatpush.msrb.mxu2 %v2927_v52 }
 0x991   :  { %v143_v60 = vpop.permute.xlu1 %142 }
 0x9e7   :  { %v1197_v30 = vpop.permute.xlu0 %1196 }
 0x9e8   :  { %v2907_v31 = vadd.f32 %v1197_v30, %v1189_v26  ;;  %v165_v26 = vmul.f32 %v2609_v28, %v143_v60 }
 0x9ea   :  { %2344 = vtanh.f32 %v2907_v31 }
 0x9eb   :  { %2346 = vpow2.f32 %v2189_v38  ;;  %v285_v38 = vpop.permute.xlu1 %284 }
 0x9f0   :  { %v2345_v33 = vpop.eup %2344 }
 0x9f1   :  { %1202 = vrot.lane.b32.xlu2 %v2345_v33, %s2473_s23  ;;  %v2347_v41 = vpop.eup %2346 }
 0x9f2   :  { %v1173_v42 = vadd.f32 1.0, %v2347_v41 }
 0x9f4   :  { %2348 = vrcp.f32 %v1173_v42  ;;  %v1185_v40 = vand.u32 2147483648, %v1173_v42  ;;  %vm1179_vm3 = vweird.f32 %v1173_v42  ;;  %v1183_v45 = vand.u32 2147483647, %v1173_v42 }
 0x9f6   :  { %v1186_v44 = vor.u32 1.1754944e-38, %v1185_v40  ;;  %vm1184_vm5 = vcmp.eq.f32.partialorder %v1183_v45, 8.507059e+37 }
 0x9f9   :  { %186 = vperm.xlu2 %2264, %v115_v49  }
 0x9fa   :  { %v2349_v51 = vpop.eup %2348 }
 0x9fb   :  { %v1175_v53 = vmul.f32 %v2349_v51, %v1173_v42  ;;  %vm1180_vm2 = vweird.f32 %v2349_v51  ;;  %v304_v42 = vmul.f32 %v2618_v36, %v285_v38 }
 0x9fc   :  { %vm1181_vm4 = vmor %vm1179_vm3, %vm1180_vm2 }
 0x9fd   :  { %v1176_v17 = vsub.f32 1.0, %v1175_v53 }
 0x9ff   :  { %v1177_v54 = vmul.f32 %v2349_v51, %v1176_v17  ;;  %v3018_v17 = vld [vmem:[%s3223_s5] ss:$0 sm:$0xff] }
 0xa01   :  { %2267 = vset.pattern.permute.xlu2 %v2468_v0  ;;  %v1178_v39 = vadd.f32 %v2349_v51, %v1177_v54 }
 0xa02   :  { %82 = vperm.xlu2 %2267, %v55_v7  }
 0xa03   :  { %v1182_v46 = vsel %vm1181_vm4, %v2349_v51, %v1178_v39 }
 0xa04   :  { %v1187_v61 = vsel %vm1184_vm5, %v1186_v44, %v1182_v46  ;;  %v3029_v44 = vld [vmem:[%s3219_s1 + $0xa] sm:$0x3] }
 0xa4b   :  { %v1203_v62 = vpop.permute.xlu2 %1202 }
 0xa4c   :  { %v1205_v63 = vmul.f32 %v1203_v62, %v1187_v61 }
 0xa4e   :  { %1232 = vrot.lane.b32.xlu0 %v1205_v63, %s2474_s24 }
 0xa53   :  { %v187_v25 = vpop.permute.xlu2 %186 }
 0xa54   :  { %v206_v30 = vmul.f32 %v2611_v29, %v187_v25 }
 0xa56   :  { %235 = vperm.xlu0 %2265, %v115_v49   ;;  %v214_v34 = vadd.f32 %v206_v30, %v165_v26  ;;  %v3012_v49 = vld [vmem:[%s3221_s3] ss:$0 sm:$0xff] }
 0xa5c   :  { %v83_v47 = vpop.permute.xlu2 %82 }
 0xa5d   :  { %v107_v51 = vmul.f32 %v3012_v49, %v83_v47 }
 0xa5e   :  { %2268 = vset.pattern.permute.xlu0 %v2471_v20 }
 0xac0   :  { %v1233_v16 = vpop.permute.xlu0 %1232 }
 0xac1   :  { %2192 = vmatmul.msk.f32.vlgmr.msrb.gmra.mxu3 %vm362_vm13, %v1233_v16  ;;  %2193 = vmatmul.msk.f32.vlgmr.msra.gmra.mxu0 %vm362_vm13, %v1233_v16 }
 0xac2   :  { %2195 = vmatmul.msk.f32.vlgmr.msra.gmra.mxu1 %vm362_vm13, %v1233_v16  ;;  %2197 = vmatmul.msk.f32.vlgmr.msra.gmra.mxu2 %vm362_vm13, %v1233_v16 }
 0xac3   :  { %1575 = vmatpush.msra.mxu0 %v2856_v3  ;;  %1531 = vmatpush.msrb.mxu3 %v2859_v4 }
 0xac4   :  { %1601 = vmatpush.msra.mxu1 %v2944_v23  ;;  %1669 = vmatpush.msra.mxu2 %v2950_v9 }
 0xac5   :  { %1576 = vmatpush.msra.mxu0 %v2864_v5  ;;  %1532 = vmatpush.msrb.mxu3 %v2867_v6 }
 0xac6   :  { %1602 = vmatpush.msra.mxu1 %v2955_v24  ;;  %1670 = vmatpush.msra.mxu2 %v2961_v10 }
 0xac7   :  { %1577 = vmatpush.msra.mxu0 %v2872_v8  ;;  %1533 = vmatpush.msrb.mxu3 %v2875_v11 }
 0xac8   :  { %1603 = vmatpush.msra.mxu1 %v2966_v14  ;;  %v236_v33 = vpop.permute.xlu0 %235 }
 0xac9   :  { %2198 = vmatmul.msk.f32.vlgmr.msra.gmra.mxu3 %vm362_vm13, %v1233_v16  ;;  %1578 = vmatpush.msra.mxu0 %v2880_v12  ;;  %v255_v35 = vmul.f32 %v2614_v32, %v236_v33 }
 0xaca   :  { %1534 = vmatpush.msrb.mxu3 %v2883_v55  ;;  %1604 = vmatpush.msra.mxu1 %v2972_v18 }
 0xacb   :  { %v263_v41 = vadd.f32 %v255_v35, %v214_v34 }
 0xacc   :  { %1692 = vmatpush.msra.mxu3 %v2978_v2 }
 0xace   :  { %1693 = vmatpush.msra.mxu3 %v2984_v15 }
 0xad0   :  { %1694 = vmatpush.msra.mxu3 %v2990_v19 }
 0xad2   :  { %1695 = vmatpush.msra.mxu3 %v2996_v56 }
 0xb3e   :  { %v1274_v61 = vpop.f32.mrf.mxu0 }
 0xb3f   :  { %v1314_v27 = vpop.f32.mrf.mxu1 }
 0xb40   :  { %1318 = vrot.lane.b32.xlu0 %v1314_v27, %s2474_s24 }
 0xb44   :  { %v1253_v21 = vpop.f32.mrf.mxu3 }
 0xb45   :  { %v1254_v57 = vadd.f32 %v1253_v21, %v1228_v13  ;;  %v1358_v58 = vpop.f32.mrf.mxu2 }
 0xb46   :  { %1362 = vrot.lane.b32.xlu1 %v1358_v58, %s2473_s23 }
 0xb47   :  { %v1256_v59 = vadd.f32 %v2735_v37, %v1254_v57  ;;  %v312_v37 = vadd.f32 %v304_v42, %v263_v41 }
 0xb49   :  { %2148 = vst [vmem:[%s3228_s10 + $0x6] sm:$0x3] %v1256_v59  ;;  %v320_v53 = vadd.f32 %v312_v37, %v107_v51 }
 0xb4b   :  { %v3021_v54 = vadd.f32 %v3018_v17, %v320_v53 }
 0xb4c   :  { %v1384_v46 = vpop.f32.mrf.mxu3 }
 0xb4d   :  { %v1277_v62 = vadd.f32 %v1274_v61, %v3021_v54 }
 0xb4f   :  { %v2194_v63 = vmul.f32 -1.442695, %v1277_v62 }
 0xbb2   :  { %v1319_v35 = vpop.permute.xlu0 %1318 }
 0xbb3   :  { %v1321_v38 = vadd.f32 %v1319_v35, %v3021_v54 }
 0xbb5   :  { %v2196_v41 = vmul.f32 -1.442695, %v1321_v38 }
 0xbb8   :  { %v1363_v39 = vpop.permute.xlu1 %1362 }
 0xbb9   :  { %v1365_v40 = vadd.f32 %v1363_v39, %v3021_v54 }
 0xbbb   :  { %2350 = vtanh.f32 %v1365_v40 }
 0xbbc   :  { %2352 = vpow2.f32 %v2194_v63 }
 0xbc1   :  { %v2351_v45 = vpop.eup %2350 }
 0xbc2   :  { %1413 = vrot.lane.b32.xlu2 %v2351_v45, %s2473_s23  ;;  %v2353_v7 = vpop.eup %2352 }
 0xbc3   :  { %v1281_v16 = vadd.f32 1.0, %v2353_v7 }
 0xbc5   :  { %2354 = vrcp.f32 %v1281_v16  ;;  %v1293_v59 = vand.u32 2147483648, %v1281_v16  ;;  %vm1287_vm7 = vweird.f32 %v1281_v16  ;;  %v1291_v60 = vand.u32 2147483647, %v1281_v16 }
 0xbc6   :  { %2356 = vpow2.f32 %v2196_v41 }
 0xbc7   :  { %v1294_v26 = vor.u32 1.1754944e-38, %v1293_v59  ;;  %vm1292_vm10 = vcmp.eq.f32.partialorder %v1291_v60, 8.507059e+37 }
 0xbca   :  { %1388 = vrot.lane.b32.xlu2 %v1384_v46, %s2475_s30 }
 0xbcb   :  { %v2355_v13 = vpop.eup %2354 }
 0xbcc   :  { %v1283_v27 = vmul.f32 %v2355_v13, %v1281_v16  ;;  %vm1288_vm6 = vweird.f32 %v2355_v13  ;;  %v2357_v42 = vpop.eup %2356 }
 0xbcd   :  { %vm1289_vm9 = vmor %vm1287_vm7, %vm1288_vm6  ;;  %v1325_v47 = vadd.f32 1.0, %v2357_v42 }
 0xbce   :  { %v1284_v21 = vsub.f32 1.0, %v1283_v27 }
 0xbcf   :  { %2358 = vrcp.f32 %v1325_v47  ;;  %v1337_v45 = vand.u32 2147483648, %v1325_v47  ;;  %vm1331_vm12 = vweird.f32 %v1325_v47  ;;  %v1335_v46 = vand.u32 2147483647, %v1325_v47 }
 0xbd0   :  { %v1285_v57 = vmul.f32 %v2355_v13, %v1284_v21 }
 0xbd1   :  { %v1338_v62 = vor.u32 1.1754944e-38, %v1337_v45  ;;  %vm1336_vm15 = vcmp.eq.f32.partialorder %v1335_v46, 8.507059e+37  ;;  %v3088_v46 = vld [vmem:[%s3227_s9] ss:$0 sm:$0xff] }
 0xbd2   :  { %147 = vperm.xlu2 %2267, %v3029_v44   ;;  %v1286_v58 = vadd.f32 %v2355_v13, %v1285_v57 }
 0xbd4   :  { %v1290_v25 = vsel %vm1289_vm9, %v2355_v13, %v1286_v58 }
 0xbd5   :  { %v1295_v33 = vsel %vm1292_vm10, %v1294_v26, %v1290_v25  ;;  %v2359_v37 = vpop.eup %2358 }
 0xbd6   :  { %v1327_v51 = vmul.f32 %v2359_v37, %v1325_v47  ;;  %vm1332_vm11 = vweird.f32 %v2359_v37 }
 0xbd7   :  { %vm1333_vm14 = vmor %vm1331_vm12, %vm1332_vm11 }
 0xbd8   :  { %v1328_v53 = vsub.f32 1.0, %v1327_v51  ;;  %v56_v51 = vld [vmem:[%s3218_s0 + $0xa] sm:$0x3] }
 0xbda   :  { %2270 = vset.pattern.permute.xlu2 %v2472_v22  ;;  %v1329_v39 = vmul.f32 %v2359_v37, %v1328_v53 }
 0xbdb   :  { %288 = vperm.xlu2 %2270, %v3029_v44  }
 0xbdc   :  { %v1330_v40 = vadd.f32 %v2359_v37, %v1329_v39 }
 0xbde   :  { %v1334_v61 = vsel %vm1333_vm14, %v2359_v37, %v1330_v40 }
 0xbdf   :  { %v1339_v63 = vsel %vm1336_vm15, %v1338_v62, %v1334_v61 }
 0xbe0   :  { %v1411_v7 = vmul.f32 %v1339_v63, %v2907_v31 }
 0xbe3   :  { %2274 = vset.pattern.permute.xlu2 %v2469_v1 }
 0xc1c   :  { %v1414_v30 = vpop.permute.xlu2 %1413 }
 0xc1d   :  { %v1416_v34 = vmul.f32 %v1414_v30, %v1295_v33  ;;  %v2200_v30 = vld [vmem:[%s3220_s2 + $0x8] sm:$0x3] }
 0xc1e   :  { %2201 = vmatmul.msk.f32.vlgmr.msrb.gmra.mxu0 %vm538_vm8, %v2200_v30 }
 0xc1f   :  { %1418 = vrot.lane.b32.xlu1 %v1416_v34, %s2474_s24  ;;  %1713 = vmatpush.msrb.mxu0 %v2918_v48 }
 0xc21   :  { %1714 = vmatpush.msrb.mxu0 %v2921_v43 }
 0xc23   :  { %1715 = vmatpush.msrb.mxu0 %v2924_v50 }
 0xc24   :  { %v1389_v21 = vpop.permute.xlu2 %1388 }
 0xc25   :  { %v1391_v57 = vadd.f32 %v1389_v21, %v3021_v54  ;;  %1716 = vmatpush.msrb.mxu0 %v2927_v52 }
 0xc27   :  { %v2199_v58 = vmul.f32 -1.442695, %v1391_v57 }
 0xc2c   :  { %v148_v63 = vpop.permute.xlu2 %147 }
 0xc2d   :  { %v166_v21 = vmul.f32 %v2609_v28, %v148_v63 }
 0xc91   :  { %v1419_v16 = vpop.permute.xlu1 %1418 }
 0xc92   :  { %v3039_v13 = vadd.f32 %v1419_v16, %v1411_v7 }
 0xc94   :  { %2360 = vtanh.f32 %v3039_v13 }
 0xc95   :  { %2362 = vpow2.f32 %v2199_v58  ;;  %v289_v58 = vpop.permute.xlu2 %288 }
 0xc9a   :  { %v2361_v27 = vpop.eup %2360 }
 0xc9b   :  { %1424 = vrot.lane.b32.xlu0 %v2361_v27, %s2473_s23  ;;  %v2363_v59 = vpop.eup %2362 }
 0xc9c   :  { %v1395_v60 = vadd.f32 1.0, %v2363_v59 }
 0xc9e   :  { %2364 = vrcp.f32 %v1395_v60  ;;  %v1407_v34 = vand.u32 2147483648, %v1395_v60  ;;  %vm1401_vm1 = vweird.f32 %v1395_v60  ;;  %v1405_v35 = vand.u32 2147483647, %v1395_v60 }
 0xca0   :  { %v1408_v41 = vor.u32 1.1754944e-38, %v1407_v34  ;;  %vm1406_vm3 = vcmp.eq.f32.partialorder %v1405_v35, 8.507059e+37 }
 0xca3   :  { %190 = vperm.xlu0 %2268, %v3029_v44  }
 0xca4   :  { %v2365_v31 = vpop.eup %2364 }
 0xca5   :  { %v1397_v25 = vmul.f32 %v2365_v31, %v1395_v60  ;;  %vm1402_vm0 = vweird.f32 %v2365_v31 }
 0xca6   :  { %vm1403_vm2 = vmor %vm1401_vm1, %vm1402_vm0 }
 0xca7   :  { %v1398_v26 = vsub.f32 1.0, %v1397_v25  ;;  %v305_v25 = vmul.f32 %v2618_v36, %v289_v58 }
 0xca9   :  { %v1399_v33 = vmul.f32 %v2365_v31, %v1398_v26 }
 0xcab   :  { %2272 = vset.pattern.permute.xlu0 %v2468_v0  ;;  %v1400_v54 = vadd.f32 %v2365_v31, %v1399_v33 }
 0xcad   :  { %v1404_v38 = vsel %vm1403_vm2, %v2365_v31, %v1400_v54 }
 0xcae   :  { %v1409_v42 = vsel %vm1406_vm3, %v1408_v41, %v1404_v38 }
 0xd0d   :  { %v1425_v47 = vpop.permute.xlu0 %1424 }
 0xd0e   :  { %v1427_v37 = vmul.f32 %v1425_v47, %v1409_v42 }
 0xd10   :  { %1454 = vrot.lane.b32.xlu1 %v1427_v37, %s2474_s24 }
 0xd15   :  { %v191_v16 = vpop.permute.xlu0 %190 }
 0xd16   :  { %v207_v27 = vmul.f32 %v2611_v29, %v191_v16 }
 0xd18   :  { %239 = vperm.xlu1 %2269, %v3029_v44   ;;  %v1450_v44 = vpop.f32.mrf.mxu0  ;;  %v215_v59 = vadd.f32 %v207_v27, %v166_v21 }
 0xd20   :  { %2271 = vset.pattern.permute.xlu1 %v2468_v0 }
 0xd21   :  { %87 = vperm.xlu1 %2271, %v56_v51  }
 0xd29   :  { %2273 = vset.pattern.permute.xlu1 %v2471_v20 }
 0xd82   :  { %v1455_v53 = vpop.permute.xlu1 %1454 }
 0xd83   :  { %2202 = vmatmul.msk.f32.vlgmr.msrb.gmra.mxu1 %vm362_vm13, %v1455_v53  ;;  %2203 = vmatmul.msk.f32.vlgmr.msrb.gmra.mxu2 %vm362_vm13, %v1455_v53 }
 0xd84   :  { %2205 = vmatmul.msk.f32.vlgmr.msrb.gmra.mxu3 %vm362_vm13, %v1455_v53  ;;  %2207 = vmatmul.msk.f32.vlgmr.msra.gmra.mxu0 %vm362_vm13, %v1455_v53 }
 0xd85   :  { %1797 = vmatpush.msrb.mxu2 %v2856_v3  ;;  %1753 = vmatpush.msrb.mxu1 %v2859_v4 }
 0xd86   :  { %1823 = vmatpush.msrb.mxu3 %v2944_v23  ;;  %1891 = vmatpush.msra.mxu0 %v2950_v9 }
 0xd87   :  { %1798 = vmatpush.msrb.mxu2 %v2864_v5  ;;  %1754 = vmatpush.msrb.mxu1 %v2867_v6 }
 0xd88   :  { %1824 = vmatpush.msrb.mxu3 %v2955_v24  ;;  %1892 = vmatpush.msra.mxu0 %v2961_v10 }
 0xd89   :  { %1799 = vmatpush.msrb.mxu2 %v2872_v8  ;;  %1755 = vmatpush.msrb.mxu1 %v2875_v11 }
 0xd8a   :  { %1825 = vmatpush.msrb.mxu3 %v2966_v14  ;;  %v240_v7 = vpop.permute.xlu1 %239 }
 0xd8b   :  { %2208 = vmatmul.msk.f32.vlgmr.msra.gmra.mxu1 %vm362_vm13, %v1455_v53  ;;  %1800 = vmatpush.msrb.mxu2 %v2880_v12  ;;  %v256_v57 = vmul.f32 %v2614_v32, %v240_v7 }
 0xd8c   :  { %1756 = vmatpush.msrb.mxu1 %v2883_v55  ;;  %1826 = vmatpush.msrb.mxu3 %v2972_v18 }
 0xd8d   :  { %v264_v31 = vadd.f32 %v256_v57, %v215_v59 }
 0xd8e   :  { %1914 = vmatpush.msra.mxu1 %v2978_v2 }
 0xd8f   :  { %v313_v30 = vadd.f32 %v305_v25, %v264_v31 }
 0xd90   :  { %1915 = vmatpush.msra.mxu1 %v2984_v15 }
 0xd92   :  { %1916 = vmatpush.msra.mxu1 %v2990_v19 }
 0xd93   :  { %v88_v60 = vpop.permute.xlu1 %87 }
 0xd94   :  { %1917 = vmatpush.msra.mxu1 %v2996_v56  ;;  %v108_v26 = vmul.f32 %v3012_v49, %v88_v60 }
 0xd96   :  { %v321_v33 = vadd.f32 %v313_v30, %v108_v26 }
 0xd98   :  { %v333_v54 = vadd.f32 %v3018_v17, %v321_v33 }
 0xe00   :  { %v1475_v39 = vpop.f32.mrf.mxu1 }
 0xe01   :  { %v1476_v40 = vadd.f32 %v1475_v39, %v1450_v44  ;;  %v1580_v45 = vpop.f32.mrf.mxu0 }
 0xe02   :  { %1584 = vrot.lane.b32.xlu2 %v1580_v45, %s2473_s23 }
 0xe03   :  { %v1478_v61 = vadd.f32 %v3088_v46, %v1476_v40 }
 0xe05   :  { %2149 = vst [vmem:[%s3228_s10 + $0x8] sm:$0x3] %v1478_v61 }
 0xe06   :  { %v1496_v42 = vpop.f32.mrf.mxu2 }
 0xe07   :  { %v1536_v62 = vpop.f32.mrf.mxu3  ;;  %v1499_v47 = vadd.f32 %v1496_v42, %v333_v54 }
 0xe08   :  { %1540 = vrot.lane.b32.xlu1 %v1536_v62, %s2474_s24  ;;  %v1606_v41 = vpop.f32.mrf.mxu1 }
 0xe09   :  { %v2204_v37 = vmul.f32 -1.442695, %v1499_v47 }
 0xe5c   :  { %v1585_v34 = vpop.permute.xlu2 %1584 }
 0xe5d   :  { %v1587_v35 = vadd.f32 %v1585_v34, %v333_v54 }
 0xe5f   :  { %2366 = vtanh.f32 %v1587_v35 }
 0xe60   :  { %2368 = vpow2.f32 %v2204_v37 }
 0xe65   :  { %v2367_v38 = vpop.eup %2366 }
 0xe66   :  { %1635 = vrot.lane.b32.xlu0 %v2367_v38, %s2473_s23  ;;  %v2369_v51 = vpop.eup %2368 }
 0xe67   :  { %v1503_v53 = vadd.f32 1.0, %v2369_v51 }
 0xe69   :  { %2370 = vrcp.f32 %v1503_v53  ;;  %v1515_v62 = vand.u32 2147483648, %v1503_v53  ;;  %vm1509_vm5 = vweird.f32 %v1503_v53  ;;  %v1513_v63 = vand.u32 2147483647, %v1503_v53 }
 0xe6b   :  { %v1516_v16 = vor.u32 1.1754944e-38, %v1515_v62  ;;  %vm1514_vm7 = vcmp.eq.f32.partialorder %v1513_v63, 8.507059e+37 }
 0xe6e   :  { %1610 = vrot.lane.b32.xlu0 %v1606_v41, %s2475_s30 }
 0xe6f   :  { %v2371_v44 = vpop.eup %2370 }
 0xe70   :  { %v1505_v39 = vmul.f32 %v2371_v44, %v1503_v53  ;;  %vm1510_vm4 = vweird.f32 %v2371_v44 }
 0xe71   :  { %vm1511_vm6 = vmor %vm1509_vm5, %vm1510_vm4 }
 0xe72   :  { %v1506_v40 = vsub.f32 1.0, %v1505_v39 }
 0xe74   :  { %v1507_v45 = vmul.f32 %v2371_v44, %v1506_v40 }
 0xe76   :  { %v1508_v61 = vadd.f32 %v2371_v44, %v1507_v45 }
 0xe78   :  { %v1512_v7 = vsel %vm1511_vm6, %v2371_v44, %v1508_v61 }
 0xe79   :  { %v1517_v21 = vsel %vm1514_vm7, %v1516_v16, %v1512_v7  ;;  %v2210_v7 = vld [vmem:[%s3220_s2 + $0xa] sm:$0x3] }
 0xe7a   :  { %v1541_v58 = vpop.permute.xlu1 %1540  ;;  %2211 = vmatmul.msk.f32.vlgmr.msra.gmra.mxu2 %vm538_vm8, %v2210_v7 }
 0xe7b   :  { %v1543_v59 = vadd.f32 %v1541_v58, %v333_v54  ;;  %1935 = vmatpush.msra.mxu2 %v2918_v48 }
 0xe7d   :  { %v2206_v60 = vmul.f32 -1.442695, %v1543_v59  ;;  %1936 = vmatpush.msra.mxu2 %v2921_v43 }
 0xe7f   :  { %2372 = vpow2.f32 %v2206_v60  ;;  %1937 = vmatpush.msra.mxu2 %v2924_v50 }
 0xe81   :  { %1938 = vmatpush.msra.mxu2 %v2927_v52 }
 0xe85   :  { %v2373_v31 = vpop.eup %2372 }
 0xe86   :  { %v1547_v25 = vadd.f32 1.0, %v2373_v31 }
 0xe88   :  { %2374 = vrcp.f32 %v1547_v25  ;;  %v1559_v38 = vand.u32 2147483648, %v1547_v25  ;;  %vm1553_vm10 = vweird.f32 %v1547_v25  ;;  %v1557_v41 = vand.u32 2147483647, %v1547_v25 }
 0xe8a   :  { %v1560_v47 = vor.u32 1.1754944e-38, %v1559_v38  ;;  %vm1558_vm12 = vcmp.eq.f32.partialorder %v1557_v41, 8.507059e+37 }
 0xe8e   :  { %v2375_v26 = vpop.eup %2374 }
 0xe8f   :  { %v1549_v30 = vmul.f32 %v2375_v26, %v1547_v25  ;;  %vm1554_vm9 = vweird.f32 %v2375_v26 }
 0xe90   :  { %vm1555_vm11 = vmor %vm1553_vm10, %vm1554_vm9 }
 0xe91   :  { %v1550_v33 = vsub.f32 1.0, %v1549_v30 }
 0xe93   :  { %v1551_v34 = vmul.f32 %v2375_v26, %v1550_v33 }
 0xe95   :  { %v1552_v35 = vadd.f32 %v2375_v26, %v1551_v34 }
 0xe97   :  { %v1556_v42 = vsel %vm1555_vm11, %v2375_v26, %v1552_v35 }
 0xe98   :  { %v1561_v37 = vsel %vm1558_vm12, %v1560_v47, %v1556_v42 }
 0xe99   :  { %v1633_v51 = vmul.f32 %v1561_v37, %v3039_v13  ;;  %v117_v13 = vld [vmem:[%s3219_s1 + $0xc] sm:$0x3] }
 0xe9a   :  { %152 = vperm.xlu0 %2272, %v117_v13  }
 0xea2   :  { %2279 = vset.pattern.permute.xlu0 %v2469_v1  ;;  %v57_v1 = vld [vmem:[%s3218_s0 + $0xc] sm:$0x3] }
 0xed8   :  { %v1636_v27 = vpop.permute.xlu0 %1635 }
 0xed9   :  { %v1638_v57 = vmul.f32 %v1636_v27, %v1517_v21 }
 0xedb   :  { %1640 = vrot.lane.b32.xlu2 %v1638_v57, %s2474_s24 }
 0xee0   :  { %v1611_v40 = vpop.permute.xlu0 %1610 }
 0xee1   :  { %v1613_v45 = vadd.f32 %v1611_v40, %v333_v54 }
 0xee3   :  { %v2209_v61 = vmul.f32 -1.442695, %v1613_v45 }
 0xf35   :  { %v1641_v53 = vpop.permute.xlu2 %1640 }
 0xf36   :  { %v3105_v44 = vadd.f32 %v1641_v53, %v1633_v51 }
 0xf38   :  { %2376 = vtanh.f32 %v3105_v44 }
 0xf39   :  { %2378 = vpow2.f32 %v2209_v61 }
 0xf3e   :  { %v2377_v39 = vpop.eup %2376 }
 0xf3f   :  { %1646 = vrot.lane.b32.xlu1 %v2377_v39, %s2473_s23  ;;  %v2379_v62 = vpop.eup %2378 }
 0xf40   :  { %v1617_v63 = vadd.f32 1.0, %v2379_v62 }
 0xf42   :  { %2380 = vrcp.f32 %v1617_v63  ;;  %v1629_v48 = vand.u32 2147483648, %v1617_v63  ;;  %vm1623_vm15 = vweird.f32 %v1617_v63  ;;  %v1627_v43 = vand.u32 2147483647, %v1617_v63 }
 0xf44   :  { %v1630_v58 = vor.u32 1.1754944e-38, %v1629_v48  ;;  %vm1628_vm1 = vcmp.eq.f32.partialorder %v1627_v43, 8.507059e+37 }
 0xf47   :  { %194 = vperm.xlu1 %2273, %v117_v13  }
 0xf48   :  { %v2381_v54 = vpop.eup %2380 }
 0xf49   :  { %v1619_v16 = vmul.f32 %v2381_v54, %v1617_v63  ;;  %vm1624_vm14 = vweird.f32 %v2381_v54 }
 0xf4a   :  { %vm1625_vm0 = vmor %vm1623_vm15, %vm1624_vm14 }
 0xf4b   :  { %v1620_v27 = vsub.f32 1.0, %v1619_v16 }
 0xf4d   :  { %v1621_v21 = vmul.f32 %v2381_v54, %v1620_v27 }
 0xf4f   :  { %2275 = vset.pattern.permute.xlu1 %v2472_v22  ;;  %v1622_v57 = vadd.f32 %v2381_v54, %v1621_v21 }
 0xf50   :  { %292 = vperm.xlu1 %2275, %v117_v13  }
 0xf51   :  { %v1626_v50 = vsel %vm1625_vm0, %v2381_v54, %v1622_v57 }
 0xf52   :  { %v1631_v52 = vsel %vm1628_vm1, %v1630_v58, %v1626_v50 }
 0xf58   :  { %2277 = vset.pattern.permute.xlu1 %v2468_v0 }
 0xfb1   :  { %v1647_v59 = vpop.permute.xlu1 %1646 }
 0xfb2   :  { %v1649_v60 = vmul.f32 %v1647_v59, %v1631_v52 }
 0xfb4   :  { %1676 = vrot.lane.b32.xlu2 %v1649_v60, %s2474_s24 }
 0xfbc   :  { %243 = vperm.xlu2 %2274, %v117_v13  }
 0xfc4   :  { %2276 = vset.pattern.permute.xlu2 %v2468_v0 }
 0xfc5   :  { %92 = vperm.xlu2 %2276, %v57_v1  }
 0xfcd   :  { %2278 = vset.pattern.permute.xlu2 %v2471_v20  ;;  %v1672_v20 = vpop.f32.mrf.mxu2 }
0x100e   :  { %v1677_v31 = vpop.permute.xlu2 %1676 }
0x100f   :  { %2212 = vmatmul.msk.f32.vlgmr.msra.gmra.mxu3 %vm362_vm13, %v1677_v31  ;;  %2213 = vmatmul.msk.f32.vlgmr.msrb.gmra.mxu0 %vm362_vm13, %v1677_v31 }
0x1010   :  { %2215 = vmatmul.msk.f32.vlgmr.msrb.gmra.mxu1 %vm362_vm13, %v1677_v31  ;;  %2217 = vmatmul.msk.f32.vlgmr.msrb.gmra.mxu2 %vm362_vm13, %v1677_v31 }
0x1011   :  { %2019 = vmatpush.msrb.mxu0 %v2856_v3  ;;  %1975 = vmatpush.msra.mxu3 %v2859_v4 }
0x1012   :  { %2045 = vmatpush.msrb.mxu1 %v2944_v23  ;;  %2113 = vmatpush.msrb.mxu2 %v2950_v9 }
0x1013   :  { %2020 = vmatpush.msrb.mxu0 %v2864_v5  ;;  %1976 = vmatpush.msra.mxu3 %v2867_v6 }
0x1014   :  { %2046 = vmatpush.msrb.mxu1 %v2955_v24  ;;  %2114 = vmatpush.msrb.mxu2 %v2961_v10 }
0x1015   :  { %2021 = vmatpush.msrb.mxu0 %v2872_v8  ;;  %1977 = vmatpush.msra.mxu3 %v2875_v11  ;;  %v195_v11 = vpop.permute.xlu1 %194 }
0x1016   :  { %2047 = vmatpush.msrb.mxu1 %v2966_v14  ;;  %v208_v23 = vmul.f32 %v2611_v29, %v195_v11 }
0x1017   :  { %2218 = vmatmul.msk.f32.vlgmr.msrb.gmra.mxu3 %vm362_vm13, %v1677_v31  ;;  %2022 = vmatpush.msrb.mxu0 %v2880_v12  ;;  %v153_v12 = vpop.permute.xlu0 %152 }
0x1018   :  { %1978 = vmatpush.msra.mxu3 %v2883_v55  ;;  %2048 = vmatpush.msrb.mxu1 %v2972_v18  ;;  %v244_v55 = vpop.permute.xlu2 %243  ;;  %v167_v9 = vmul.f32 %v2609_v28, %v153_v12 }
0x1019   :  { %v257_v24 = vmul.f32 %v2614_v32, %v244_v55 }
0x101a   :  { %2136 = vmatpush.msrb.mxu3 %v2978_v2  ;;  %v216_v10 = vadd.f32 %v208_v23, %v167_v9 }
0x101c   :  { %2137 = vmatpush.msrb.mxu3 %v2984_v15  ;;  %v265_v18 = vadd.f32 %v257_v24, %v216_v10  ;;  %v2220_v10 = vld [vmem:[%s3220_s2 + $0xc] sm:$0x3] }
0x101d   :  { %v293_v14 = vpop.permute.xlu1 %292  ;;  %2221 = vmatmul.msk.f32.vlgmr.msra.gmra.mxu0 %vm538_vm8, %v2220_v10 }
0x101e   :  { %2138 = vmatpush.msrb.mxu3 %v2990_v19  ;;  %v306_v2 = vmul.f32 %v2618_v36, %v293_v14 }
0x1020   :  { %2139 = vmatpush.msrb.mxu3 %v2996_v56  ;;  %v93_v15 = vpop.permute.xlu2 %92  ;;  %v314_v19 = vadd.f32 %v306_v2, %v265_v18 }
0x1021   :  { %v109_v56 = vmul.f32 %v3012_v49, %v93_v15 }
0x1023   :  { %v322_v25 = vadd.f32 %v314_v19, %v109_v56 }
0x1025   :  { %v334_v26 = vadd.f32 %v3018_v17, %v322_v25 }
0x108c   :  { %v1718_v38 = vpop.f32.mrf.mxu0 }
0x108d   :  { %v1758_v3 = vpop.f32.mrf.mxu1  ;;  %v1721_v41 = vadd.f32 %v1718_v38, %v334_v26  ;;  %v58_v38 = vld [vmem:[%s3218_s0 + $0xe] sm:$0x3] }
0x108e   :  { %1762 = vrot.lane.b32.xlu2 %v1758_v3, %s2474_s24 }
0x108f   :  { %v2214_v42 = vmul.f32 -1.442695, %v1721_v41 }
0x1092   :  { %v1697_v4 = vpop.f32.mrf.mxu3 }
0x1093   :  { %v1698_v5 = vadd.f32 %v1697_v4, %v1672_v20  ;;  %v1802_v6 = vpop.f32.mrf.mxu2 }
0x1094   :  { %1806 = vrot.lane.b32.xlu0 %v1802_v6, %s2473_s23 }
0x1095   :  { %v1700_v8 = vadd.f32 %v3088_v46, %v1698_v5 }
0x1097   :  { %2150 = vst [vmem:[%s3228_s10 + $0xa] sm:$0x3] %v1700_v8 }
0x109a   :  { %v1828_v35 = vpop.f32.mrf.mxu3 }
0x10e8   :  { %v1763_v27 = vpop.permute.xlu2 %1762 }
0x10e9   :  { %v1765_v21 = vadd.f32 %v1763_v27, %v334_v26 }
0x10eb   :  { %v2216_v57 = vmul.f32 -1.442695, %v1765_v21 }
0x1106   :  { %v1807_v30 = vpop.permute.xlu0 %1806 }
0x1107   :  { %v1809_v33 = vadd.f32 %v1807_v30, %v334_v26 }
0x1109   :  { %2382 = vtanh.f32 %v1809_v33 }
0x110a   :  { %2384 = vpow2.f32 %v2214_v42  ;;  %v1894_v42 = vpop.f32.mrf.mxu0 }
0x110f   :  { %v2383_v34 = vpop.eup %2382 }
0x1110   :  { %1857 = vrot.lane.b32.xlu1 %v2383_v34, %s2473_s23  ;;  %v2385_v47 = vpop.eup %2384 }
0x1111   :  { %v1725_v37 = vadd.f32 1.0, %v2385_v47 }
0x1113   :  { %2386 = vrcp.f32 %v1725_v37  ;;  %v1737_v61 = vand.u32 2147483648, %v1725_v37  ;;  %vm1731_vm3 = vweird.f32 %v1725_v37  ;;  %v1735_v62 = vand.u32 2147483647, %v1725_v37 }
0x1114   :  { %2388 = vpow2.f32 %v2216_v57 }
0x1115   :  { %v1738_v7 = vor.u32 1.1754944e-38, %v1737_v61  ;;  %vm1736_vm5 = vcmp.eq.f32.partialorder %v1735_v62, 8.507059e+37 }
0x1118   :  { %1832 = vrot.lane.b32.xlu1 %v1828_v35, %s2475_s30  ;;  %v118_v35 = vld [vmem:[%s3219_s1 + $0xe] sm:$0x3] }
0x1119   :  { %v2387_v51 = vpop.eup %2386 }
0x111a   :  { %v1727_v53 = vmul.f32 %v2387_v51, %v1725_v37  ;;  %vm1732_vm2 = vweird.f32 %v2387_v51  ;;  %v2389_v48 = vpop.eup %2388 }
0x111b   :  { %vm1733_vm4 = vmor %vm1731_vm3, %vm1732_vm2  ;;  %v1769_v43 = vadd.f32 1.0, %v2389_v48 }
0x111c   :  { %v1728_v39 = vsub.f32 1.0, %v1727_v53 }
0x111d   :  { %2390 = vrcp.f32 %v1769_v43  ;;  %v1781_v1 = vand.u32 2147483648, %v1769_v43  ;;  %vm1775_vm7 = vweird.f32 %v1769_v43  ;;  %v1779_v31 = vand.u32 2147483647, %v1769_v43 }
0x111e   :  { %v1729_v40 = vmul.f32 %v2387_v51, %v1728_v39 }
0x111f   :  { %v1782_v3 = vor.u32 1.1754944e-38, %v1781_v1  ;;  %vm1780_vm10 = vcmp.eq.f32.partialorder %v1779_v31, 8.507059e+37 }
0x1120   :  { %v1730_v45 = vadd.f32 %v2387_v51, %v1729_v40  ;;  %157 = vperm.xlu1 %2277, %v118_v35  }
0x1122   :  { %v1734_v63 = vsel %vm1733_vm4, %v2387_v51, %v1730_v45 }
0x1123   :  { %v1739_v54 = vsel %vm1736_vm5, %v1738_v7, %v1734_v63  ;;  %v2391_v50 = vpop.eup %2390 }
0x1124   :  { %v1771_v58 = vmul.f32 %v2391_v50, %v1769_v43  ;;  %vm1776_vm6 = vweird.f32 %v2391_v50 }
0x1125   :  { %vm1777_vm9 = vmor %vm1775_vm7, %vm1776_vm6 }
0x1126   :  { %v1772_v52 = vsub.f32 1.0, %v1771_v58 }
0x1128   :  { %v1773_v59 = vmul.f32 %v2391_v50, %v1772_v52  ;;  %2280 = vset.pattern.permute.xlu1 %v2472_v22 }
0x1129   :  { %296 = vperm.xlu1 %2280, %v118_v35  }
0x112a   :  { %v1774_v60 = vadd.f32 %v2391_v50, %v1773_v59 }
0x112c   :  { %v1778_v20 = vsel %vm1777_vm9, %v2391_v50, %v1774_v60 }
0x112d   :  { %v1783_v4 = vsel %vm1780_vm10, %v1782_v3, %v1778_v20 }
0x112e   :  { %v1855_v5 = vmul.f32 %v1783_v4, %v3105_v44 }
0x1182   :  { %v1858_v13 = vpop.permute.xlu1 %1857 }
0x1183   :  { %v1860_v16 = vmul.f32 %v1858_v13, %v1739_v54 }
0x1185   :  { %1862 = vrot.lane.b32.xlu0 %v1860_v16, %s2474_s24 }
0x118a   :  { %v1833_v12 = vpop.permute.xlu1 %1832 }
0x118b   :  { %v1835_v55 = vadd.f32 %v1833_v12, %v334_v26 }
0x118d   :  { %v2219_v23 = vmul.f32 -1.442695, %v1835_v55 }
0x1192   :  { %v158_v53 = vpop.permute.xlu1 %157 }
0x1193   :  { %v168_v40 = vmul.f32 %v2609_v28, %v158_v53 }
0x119b   :  { %v297_v7 = vpop.permute.xlu1 %296 }
0x119c   :  { %v307_v54 = vmul.f32 %v2618_v36, %v297_v7 }
0x11f7   :  { %v1863_v6 = vpop.permute.xlu0 %1862 }
0x11f8   :  { %v3168_v8 = vadd.f32 %v1863_v6, %v1855_v5 }
0x11fa   :  { %2392 = vtanh.f32 %v3168_v8 }
0x11fb   :  { %2394 = vpow2.f32 %v2219_v23 }
0x1200   :  { %v2393_v11 = vpop.eup %2392 }
0x1201   :  { %1868 = vrot.lane.b32.xlu2 %v2393_v11, %s2473_s23  ;;  %v2395_v9 = vpop.eup %2394 }
0x1202   :  { %v1839_v24 = vadd.f32 1.0, %v2395_v9 }
0x1204   :  { %2396 = vrcp.f32 %v1839_v24  ;;  %v1851_v19 = vand.u32 2147483648, %v1839_v24  ;;  %vm1845_vm12 = vweird.f32 %v1839_v24  ;;  %v1849_v56 = vand.u32 2147483647, %v1839_v24 }
0x1206   :  { %v1852_v26 = vor.u32 1.1754944e-38, %v1851_v19  ;;  %vm1850_vm15 = vcmp.eq.f32.partialorder %v1849_v56, 8.507059e+37 }
0x1209   :  { %198 = vperm.xlu2 %2278, %v118_v35  }
0x120a   :  { %v2397_v44 = vpop.eup %2396 }
0x120b   :  { %v1841_v14 = vmul.f32 %v2397_v44, %v1839_v24  ;;  %vm1846_vm11 = vweird.f32 %v2397_v44 }
0x120c   :  { %vm1847_vm14 = vmor %vm1845_vm12, %vm1846_vm11 }
0x120d   :  { %v1842_v18 = vsub.f32 1.0, %v1841_v14 }
0x120f   :  { %v1843_v2 = vmul.f32 %v2397_v44, %v1842_v18 }
0x1211   :  { %v1844_v15 = vadd.f32 %v2397_v44, %v1843_v2  ;;  %2281 = vset.pattern.permute.xlu2 %v2468_v0 }
0x1212   :  { %97 = vperm.xlu2 %2281, %v58_v38  }
0x1213   :  { %v1848_v25 = vsel %vm1847_vm14, %v2397_v44, %v1844_v15 }
0x1214   :  { %v1853_v30 = vsel %vm1850_vm15, %v1852_v26, %v1848_v25 }
0x125b   :  { %v1869_v33 = vpop.permute.xlu2 %1868 }
0x125c   :  { %v1871_v34 = vmul.f32 %v1869_v33, %v1853_v30 }
0x125e   :  { %1898 = vrot.lane.b32.xlu0 %v1871_v34, %s2474_s24 }
0x1263   :  { %v199_v39 = vpop.permute.xlu2 %198 }
0x1264   :  { %v209_v45 = vmul.f32 %v2611_v29, %v199_v39 }
0x1266   :  { %247 = vperm.xlu0 %2279, %v118_v35   ;;  %v217_v62 = vadd.f32 %v209_v45, %v168_v40 }
0x126c   :  { %v98_v16 = vpop.permute.xlu2 %97 }
0x126d   :  { %v110_v21 = vmul.f32 %v3012_v49, %v98_v16 }
0x126e   :  { %2282 = vset.pattern.permute.xlu0 %v2472_v22 }
0x12d0   :  { %v1899_v41 = vpop.permute.xlu0 %1898 }
0x12d1   :  { %2222 = vmatmul.msk.f32.vlgmr.msra.gmra.mxu1 %vm362_vm13, %v1899_v41  ;;  %2223 = vmatmul.msk.f32.vlgmr.msra.gmra.mxu2 %vm362_vm13, %v1899_v41 }
0x12d2   :  { %2225 = vmatmul.msk.f32.vlgmr.msra.gmra.mxu3 %vm362_vm13, %v1899_v41  ;;  %2227 = vmatmul.msk.f32.vlgmr.msrb.gmra.mxu0 %vm362_vm13, %v1899_v41 }
0x12d8   :  { %v248_v61 = vpop.permute.xlu0 %247 }
0x12d9   :  { %2228 = vmatmul.msk.f32.vlgmr.msrb.gmra.mxu1 %vm362_vm13, %v1899_v41  ;;  %v258_v63 = vmul.f32 %v2614_v32, %v248_v61 }
0x12db   :  { %v266_v13 = vadd.f32 %v258_v63, %v217_v62 }
0x12dd   :  { %v315_v27 = vadd.f32 %v307_v54, %v266_v13  ;;  %v2230_v54 = vld [vmem:[%s3220_s2 + $0xe] sm:$0x3] }
0x12de   :  { %2231 = vmatmul.msk.f32.vlgmr.msrb.gmra.mxu2 %vm538_vm8, %v2230_v54 }
0x12df   :  { %v323_v57 = vadd.f32 %v315_v27, %v110_v21 }
0x12e1   :  { %v335_v48 = vadd.f32 %v3018_v17, %v323_v57 }
0x134e   :  { %v1919_v47 = vpop.f32.mrf.mxu1 }
0x134f   :  { %v1920_v37 = vadd.f32 %v1919_v47, %v1894_v42  ;;  %v2024_v51 = vpop.f32.mrf.mxu0 }
0x1350   :  { %2028 = vrot.lane.b32.xlu1 %v2024_v51, %s2473_s23 }
0x1351   :  { %v1922_v0 = vadd.f32 %v3088_v46, %v1920_v37 }
0x1353   :  { %2151 = vst [vmem:[%s3228_s10 + $0xc] sm:$0x3] %v1922_v0 }
0x1354   :  { %v1940_v32 = vpop.f32.mrf.mxu2 }
0x1355   :  { %v1980_v22 = vpop.f32.mrf.mxu3  ;;  %v1943_v58 = vadd.f32 %v1940_v32, %v335_v48 }
0x1356   :  { %1984 = vrot.lane.b32.xlu0 %v1980_v22, %s2474_s24  ;;  %v2050_v29 = vpop.f32.mrf.mxu1 }
0x1357   :  { %v2224_v52 = vmul.f32 -1.442695, %v1943_v58 }
0x1361   :  { %v2116_v27 = vpop.f32.mrf.mxu2 }
0x13c2   :  { %v2029_v43 = vpop.permute.xlu1 %2028 }
0x13c3   :  { %v2031_v50 = vadd.f32 %v2029_v43, %v335_v48 }
0x13c5   :  { %2398 = vtanh.f32 %v2031_v50 }
0x13c6   :  { %2400 = vpow2.f32 %v2224_v52 }
0x13c8   :  { %v1985_v55 = vpop.permute.xlu0 %1984 }
0x13c9   :  { %v1987_v23 = vadd.f32 %v1985_v55, %v335_v48 }
0x13cb   :  { %v2399_v28 = vpop.eup %2398  ;;  %v2226_v9 = vmul.f32 -1.442695, %v1987_v23 }
0x13cc   :  { %2079 = vrot.lane.b32.xlu2 %v2399_v28, %s2473_s23  ;;  %v2401_v36 = vpop.eup %2400 }
0x13cd   :  { %v1947_v59 = vadd.f32 1.0, %v2401_v36 }
0x13cf   :  { %2402 = vrcp.f32 %v1947_v59  ;;  %v1959_v20 = vand.u32 2147483648, %v1947_v59  ;;  %vm1953_vm1 = vweird.f32 %v1947_v59  ;;  %v1957_v3 = vand.u32 2147483647, %v1947_v59 }
0x13d0   :  { %2404 = vpow2.f32 %v2226_v9 }
0x13d1   :  { %v1960_v5 = vor.u32 1.1754944e-38, %v1959_v20  ;;  %vm1958_vm3 = vcmp.eq.f32.partialorder %v1957_v3, 8.507059e+37 }
0x13d4   :  { %2054 = vrot.lane.b32.xlu2 %v2050_v29, %s2475_s30 }
0x13d5   :  { %v2403_v49 = vpop.eup %2402 }
0x13d6   :  { %v1949_v60 = vmul.f32 %v2403_v49, %v1947_v59  ;;  %vm1954_vm0 = vweird.f32 %v2403_v49  ;;  %v2405_v24 = vpop.eup %2404 }
0x13d7   :  { %vm1955_vm2 = vmor %vm1953_vm1, %vm1954_vm0  ;;  %v1991_v10 = vadd.f32 1.0, %v2405_v24 }
0x13d8   :  { %v1950_v1 = vsub.f32 1.0, %v1949_v60 }
0x13d9   :  { %2406 = vrcp.f32 %v1991_v10  ;;  %v2003_v19 = vand.u32 2147483648, %v1991_v10  ;;  %vm1997_vm5 = vweird.f32 %v1991_v10  ;;  %v2001_v56 = vand.u32 2147483647, %v1991_v10 }
0x13da   :  { %v1951_v17 = vmul.f32 %v2403_v49, %v1950_v1 }
0x13db   :  { %v2004_v26 = vor.u32 1.1754944e-38, %v2003_v19  ;;  %vm2002_vm7 = vcmp.eq.f32.partialorder %v2001_v56, 8.507059e+37 }
0x13dc   :  { %v1952_v31 = vadd.f32 %v2403_v49, %v1951_v17 }
0x13de   :  { %v1956_v4 = vsel %vm1955_vm2, %v2403_v49, %v1952_v31 }
0x13df   :  { %v1961_v11 = vsel %vm1958_vm3, %v1960_v5, %v1956_v4  ;;  %v2407_v44 = vpop.eup %2406 }
0x13e0   :  { %v1993_v14 = vmul.f32 %v2407_v44, %v1991_v10  ;;  %vm1998_vm4 = vweird.f32 %v2407_v44 }
0x13e1   :  { %vm1999_vm6 = vmor %vm1997_vm5, %vm1998_vm4 }
0x13e2   :  { %v1994_v18 = vsub.f32 1.0, %v1993_v14 }
0x13e4   :  { %v1995_v2 = vmul.f32 %v2407_v44, %v1994_v18 }
0x13e6   :  { %v1996_v15 = vadd.f32 %v2407_v44, %v1995_v2 }
0x13e8   :  { %v2000_v25 = vsel %vm1999_vm6, %v2407_v44, %v1996_v15 }
0x13e9   :  { %v2005_v30 = vsel %vm2002_vm7, %v2004_v26, %v2000_v25 }
0x13ea   :  { %v2077_v33 = vmul.f32 %v2005_v30, %v3168_v8 }
0x1426   :  { %v2080_v6 = vpop.permute.xlu2 %2079 }
0x1427   :  { %v2082_v12 = vmul.f32 %v2080_v6, %v1961_v11 }
0x1429   :  { %2084 = vrot.lane.b32.xlu1 %v2082_v12, %s2474_s24 }
0x142e   :  { %v2055_v41 = vpop.permute.xlu2 %2054 }
0x142f   :  { %v2057_v42 = vadd.f32 %v2055_v41, %v335_v48 }
0x1431   :  { %v2229_v47 = vmul.f32 -1.442695, %v2057_v42 }
0x149b   :  { %v2085_v34 = vpop.permute.xlu1 %2084 }
0x149c   :  { %v2087_v35 = vadd.f32 %v2085_v34, %v2077_v33 }
0x149e   :  { %2408 = vtanh.f32 %v2087_v35 }
0x149f   :  { %2410 = vpow2.f32 %v2229_v47 }
0x14a4   :  { %v2409_v38 = vpop.eup %2408 }
0x14a5   :  { %2090 = vrot.lane.b32.xlu0 %v2409_v38, %s2473_s23  ;;  %v2411_v37 = vpop.eup %2410 }
0x14a6   :  { %v2061_v51 = vadd.f32 1.0, %v2411_v37 }
0x14a8   :  { %2412 = vrcp.f32 %v2061_v51  ;;  %v2073_v8 = vand.u32 2147483648, %v2061_v51  ;;  %vm2067_vm10 = vweird.f32 %v2061_v51  ;;  %v2071_v45 = vand.u32 2147483647, %v2061_v51 }
0x14aa   :  { %v2074_v62 = vor.u32 1.1754944e-38, %v2073_v8  ;;  %vm2072_vm12 = vcmp.eq.f32.partialorder %v2071_v45, 8.507059e+37 }
0x14ae   :  { %v2413_v0 = vpop.eup %2412 }
0x14af   :  { %v2063_v22 = vmul.f32 %v2413_v0, %v2061_v51  ;;  %vm2068_vm9 = vweird.f32 %v2413_v0 }
0x14b0   :  { %vm2069_vm11 = vmor %vm2067_vm10, %vm2068_vm9 }
0x14b1   :  { %v2064_v53 = vsub.f32 1.0, %v2063_v22 }
0x14b3   :  { %v2065_v39 = vmul.f32 %v2413_v0, %v2064_v53 }
0x14b5   :  { %v2066_v40 = vadd.f32 %v2413_v0, %v2065_v39 }
0x14b7   :  { %v2070_v61 = vsel %vm2069_vm11, %v2413_v0, %v2066_v40 }
0x14b8   :  { %v2075_v63 = vsel %vm2072_vm12, %v2074_v62, %v2070_v61 }
0x1517   :  { %v2091_v7 = vpop.permute.xlu0 %2090 }
0x1518   :  { %v2093_v13 = vmul.f32 %v2091_v7, %v2075_v63 }
0x151a   :  { %2120 = vrot.lane.b32.xlu1 %v2093_v13, %s2474_s24 }
0x158c   :  { %v2121_v16 = vpop.permute.xlu1 %2120 }
0x158d   :  { %2232 = vmatmul.msk.f32.vlgmr.msrb.gmra.mxu3 %vm362_vm13, %v2121_v16 }
0x1610   :  { %v2141_v21 = vpop.f32.mrf.mxu3 }
0x1611   :  { %v2142_v57 = vadd.f32 %v2141_v21, %v2116_v27 }
0x1613   :  { %v2144_v48 = vadd.f32 %v3088_v46, %v2142_v57 }
0x1615   :  { %2152 = vst [vmem:[%s3228_s10 + $0xe] sm:$0x3] %v2144_v48 }
0x1616   :  { %2157 = vsyncpa [#allocation3], 1 }

</bundles_post_ra>
